<compile_context>
chip_gen: v7x
topology: tpu7x:2x2x1
jax: 0.10.0
libtpu: 0.0.40
codegen_flags: <defaults>
</compile_context>

<pallas_src>
import jax
import jax.numpy as jnp
from jax.experimental import pallas as pl
from jax.experimental.pallas import tpu as pltpu

# ---------------- model hyper-parameters (small, consistent with module) ----
NUM_AXIS = 3
NUM_LANDMARKS = 16
HIDDEN = 32               # LSTM hidden_size
NUM_LAYERS = 2            # hardcoded below (layer 0 + layer 1 in one kernel)
FC_HIDDEN = 128           # FullyConnectedNN hidden_dim (hardcoded in module)
NUM_CLASSES = 2
D_IN = NUM_AXIS * NUM_LANDMARKS   # LSTM input_size = 48
LANES = 128
SUB = 8                   # sublane width

B = 2    # example batch
T = 8    # frames / sequence length

# Row offsets inside the single packed parameter slab (all multiples of 8 so
# every static ref slice is (8,128)-tile aligned).
R_WIH0 = 0                       # (D_IN, 4H)
R_WHH0 = R_WIH0 + D_IN           # (H, 4H)      = 48
R_WIH1 = R_WHH0 + HIDDEN         # (H, 4H)      = 80
R_WHH1 = R_WIH1 + HIDDEN         # (H, 4H)      = 112
R_B0 = R_WHH1 + HIDDEN           # (1, 4H)      = 144
R_B1 = R_B0 + SUB                # (1, 4H)      = 152
R_FW1 = R_B1 + SUB               # (H, 128)     = 160
R_FB1 = R_FW1 + HIDDEN           # (1, 128)     = 192
R_FW2T = R_FB1 + SUB             # (8, 128) fw2 transposed, rows>=2 are zero = 200
R_FB2 = R_FW2T + SUB             # (1, 128) lanes>=2 are zero               = 208
P_ROWS = R_FB2 + SUB             # 216 rows x 128 lanes x 4B ~= 108 KB


# ------------------------------- kernel -------------------------------------
def _motion_kernel(x_ref, p_ref, out_ref):
    H = HIDDEN
    Bp = out_ref.shape[0]                 # padded batch (multiple of 8)
    TB, D = x_ref.shape
    F = TB // Bp

    wih0 = p_ref[R_WIH0:R_WIH0 + D, :]    # (D, 4H)
    whh0 = p_ref[R_WHH0:R_WHH0 + H, :]    # (H, 4H)
    wih1 = p_ref[R_WIH1:R_WIH1 + H, :]    # (H, 4H)
    whh1 = p_ref[R_WHH1:R_WHH1 + H, :]    # (H, 4H)
    b0 = p_ref[R_B0:R_B0 + 1, :]          # (1, 4H)
    b1 = p_ref[R_B1:R_B1 + 1, :]          # (1, 4H)

    # Hoisted layer-0 input projection: no recurrent dependence, one big
    # (F*Bp, D) x (D, 4H) matmul off the critical path.  x is time-major, so
    # step t owns the contiguous, vreg-aligned rows [t*Bp, (t+1)*Bp).
    xproj = jnp.dot(x_ref[...], wih0,
                    preferred_element_type=jnp.float32) + b0   # (F*Bp, 4H)

    h0 = jnp.zeros((Bp, H), jnp.float32)
    c0 = jnp.zeros((Bp, H), jnp.float32)
    h1 = jnp.zeros((Bp, H), jnp.float32)
    c1 = jnp.zeros((Bp, H), jnp.float32)

    def lstm_gates(g, c):
        # One full-vreg sigmoid pass; tanh only over the 32-lane g-gate slice
        # (saves transcendental lanes on the serial chain, matters on v5e).
        sg = jax.nn.sigmoid(g)
        i = sg[:, 0:H]
        f = sg[:, H:2 * H]
        o = sg[:, 3 * H:4 * H]
        gg = jnp.tanh(g[:, 2 * H:3 * H])
        c_new = f * c + i * gg
        h_new = o * jnp.tanh(c_new)
        return h_new, c_new

    # Fully-unrolled recurrence; all state stays in vregs.
    for t in range(F):
        # Both recurrent projections are issued up front: neither depends on
        # this step's layer-0 output, so the MXU pushes overlap layer-0
        # gating (replaces the old per-step [h0|h1] lane concat).
        hh0 = jnp.dot(h0, whh0, preferred_element_type=jnp.float32)
        hh1 = jnp.dot(h1, whh1, preferred_element_type=jnp.float32)

        g0 = xproj[t * Bp:(t + 1) * Bp, :] + hh0
        h0, c0 = lstm_gates(g0, c0)

        g1 = jnp.dot(h0, wih1, preferred_element_type=jnp.float32) + hh1 + b1
        h1, c1 = lstm_gates(g1, c1)

    # FC head on the final layer-1 hidden state: Linear -> ReLU -> Linear.
    fw1 = p_ref[R_FW1:R_FW1 + H, :]                # (H, 128)
    fb1 = p_ref[R_FB1:R_FB1 + 1, :]                # (1, 128)
    fw2t = p_ref[R_FW2T:R_FW2T + SUB, :]           # (8, 128): row r = fw2[:, r]
    fb2 = p_ref[R_FB2:R_FB2 + 1, :]                # (1, 128): lanes >= 2 zero

    hid = jnp.maximum(
        jnp.dot(h1, fw1, preferred_element_type=jnp.float32) + fb1, 0.0)
    # Compact classifier weights (no (128,128) zero pad): contract the
    # 128-lane axis of hid against the 128-lane axis of fw2t -> (Bp, 8).
    logits8 = jax.lax.dot_general(
        hid, fw2t, (((1,), (1,)), ((), ())),
        preferred_element_type=jnp.float32) + fb2[:, 0:SUB]
    # Lane-dense (Bp, 128) store: pad the 8 class lanes out to the full vreg
    # so the writeback is an unmasked vst / clean DMA.
    tail = jnp.zeros((Bp, LANES - SUB), jnp.float32)
    out_ref[...] = jnp.concatenate([logits8, tail], axis=1).astype(out_ref.dtype)


# ------------------------------- packing (ONE-TIME, hoisted) -----------------
def pack_params(p):
    """Pack the 11 parameter arrays into ONE lane-dense (216, 128) f32 slab.

    Call once at init; pass the result to every forward call so no concat/pad
    XLA ops (or their HBM writebacks) run on the per-call path.
    """
    def pad_rows(a, rows):
        return jnp.pad(a, ((0, rows - a.shape[0]), (0, 0)))

    def pad_lanes(a, lanes=LANES):
        return jnp.pad(a, ((0, 0), (0, lanes - a.shape[1])))

    fw2t = pad_rows(p["fw2"].T, SUB)          # (8, 128), rows >= NUM_CLASSES zero
    fb2 = pad_lanes(p["fb2"])                 # (1, 128), lanes >= NUM_CLASSES zero
    slab = jnp.concatenate([
        p["wih0"],                    # rows [  0,  48)
        p["whh0"],                    # rows [ 48,  80)
        p["wih1"],                    # rows [ 80, 112)
        p["whh1"],                    # rows [112, 144)
        pad_rows(p["b0"], SUB),       # rows [144, 152)
        pad_rows(p["b1"], SUB),       # rows [152, 160)
        p["fw1"],                     # rows [160, 192)
        pad_rows(p["fb1"], SUB),      # rows [192, 200)
        fw2t,                         # rows [200, 208)
        pad_rows(fb2, SUB),           # rows [208, 216)
    ], axis=0).astype(jnp.float32)
    assert slab.shape == (P_ROWS, LANES)
    return slab


# ------------------------------- per-call wrapper -----------------------------
def motion_classifier_forward(x, packed):
    """x: (B, F, num_landmarks, num_axis) f32, packed: (216,128) f32 slab
    -> (B, num_classes) logits."""
    Bsz, F, L, A = x.shape
    D = L * A
    x = x.reshape(Bsz, F, D)
    # Pad batch to the 8-sublane width so every vreg/MXU push/per-step slice
    # is (8,128)-tile aligned; padded rows are sliced away below.
    b_pad = -(-Bsz // SUB) * SUB
    if b_pad != Bsz:
        x = jnp.pad(x, ((0, b_pad - Bsz), (0, 0), (0, 0)))
    # Time-major so step t owns contiguous rows [t*b_pad, (t+1)*b_pad).
    x_tb = jnp.transpose(x, (1, 0, 2)).reshape(F * b_pad, D)

    flops = (2 * F * b_pad * D * 4 * HIDDEN
             + F * 3 * 2 * b_pad * HIDDEN * 4 * HIDDEN
             + 2 * b_pad * HIDDEN * FC_HIDDEN
             + 2 * b_pad * FC_HIDDEN * SUB)
    transcendentals = F * 2 * b_pad * (4 * HIDDEN + 2 * HIDDEN)
    bytes_accessed = (x_tb.size + P_ROWS * LANES + b_pad * LANES) * 4

    out = pl.pallas_call(
        _motion_kernel,
        out_shape=jax.ShapeDtypeStruct((b_pad, LANES), jnp.float32),
        in_specs=[pl.BlockSpec(memory_space=pltpu.MemorySpace.VMEM),
                  pl.BlockSpec(memory_space=pltpu.MemorySpace.VMEM)],
        out_specs=pl.BlockSpec(memory_space=pltpu.MemorySpace.VMEM),
        cost_estimate=pl.CostEstimate(flops=flops,
                                      transcendentals=transcendentals,
                                      bytes_accessed=bytes_accessed),
    )(x_tb, packed)
    return out[:Bsz, :NUM_CLASSES]


# ---------------- deterministic parameter construction -----------------------
def make_params(key):
    ks = jax.random.split(key, 12)
    s = 1.0 / jnp.sqrt(HIDDEN)
    u = lambda k, shape, sc: jax.random.uniform(k, shape, jnp.float32, -sc, sc)

    # LSTM layer 0 (PyTorch stores W_ih: (4H, D); we keep the pre-transposed
    # (in, out) layout, gate order i|f|g|o; b = b_ih + b_hh).
    wih0 = u(ks[0], (D_IN, 4 * HIDDEN), s)
    whh0 = u(ks[1], (HIDDEN, 4 * HIDDEN), s)
    b0 = u(ks[2], (1, 4 * HIDDEN), s) + u(ks[3], (1, 4 * HIDDEN), s)
    # LSTM layer 1
    wih1 = u(ks[4], (HIDDEN, 4 * HIDDEN), s)
    whh1 = u(ks[5], (HIDDEN, 4 * HIDDEN), s)
    b1 = u(ks[6], (1, 4 * HIDDEN), s) + u(ks[7], (1, 4 * HIDDEN), s)
    # TODO(synk): FullyConnectedNN definition not given; assumed
    # Linear(hidden, 128) -> ReLU -> Linear(128, num_classes).
    s1 = 1.0 / jnp.sqrt(HIDDEN)
    s2 = 1.0 / jnp.sqrt(FC_HIDDEN)
    fw1 = u(ks[8], (HIDDEN, FC_HIDDEN), s1)
    fb1 = u(ks[9], (1, FC_HIDDEN), s1)
    fw2 = u(ks[10], (FC_HIDDEN, NUM_CLASSES), s2)
    fb2 = u(ks[11], (1, NUM_CLASSES), s2)
    return dict(wih0=wih0, whh0=whh0, b0=b0, wih1=wih1, whh1=whh1, b1=b1,
                fw1=fw1, fb1=fb1, fw2=fw2, fb2=fb2)


# ---------------- pure-JAX reference (for correctness check) -----------------
def reference_forward(x, p):
    hi = jax.lax.Precision.HIGHEST
    Bsz, F, L, A = x.shape
    xf = x.reshape(Bsz, F, L * A)
    H = HIDDEN

    def cell(h, c, x_t, wih, whh, b):
        g = (jnp.dot(x_t, wih, precision=hi)
             + jnp.dot(h, whh, precision=hi) + b)
        i = jax.nn.sigmoid(g[:, 0:H])
        f = jax.nn.sigmoid(g[:, H:2 * H])
        gg = jnp.tanh(g[:, 2 * H:3 * H])
        o = jax.nn.sigmoid(g[:, 3 * H:4 * H])
        c = f * c + i * gg
        h = o * jnp.tanh(c)
        return h, c

    h0 = jnp.zeros((Bsz, H)); c0 = jnp.zeros((Bsz, H))
    h1 = jnp.zeros((Bsz, H)); c1 = jnp.zeros((Bsz, H))
    for t in range(F):
        h0, c0 = cell(h0, c0, xf[:, t, :], p["wih0"], p["whh0"], p["b0"])
        h1, c1 = cell(h1, c1, h0, p["wih1"], p["whh1"], p["b1"])
    hid = jnp.maximum(jnp.dot(h1, p["fw1"], precision=hi) + p["fb1"], 0.0)
    return jnp.dot(hid, p["fw2"], precision=hi) + p["fb2"]


if __name__ == "__main__":
    key = jax.random.PRNGKey(0)
    k_x, k_p = jax.random.split(key)
    x = jax.random.normal(k_x, (B, T, NUM_LANDMARKS, NUM_AXIS), jnp.float32)
    params = make_params(k_p)

    # One-time parameter packing (hoisted out of the per-call path).
    packed = jax.block_until_ready(pack_params(params))

    fwd = jax.jit(motion_classifier_forward)
    out = jax.block_until_ready(fwd(x, packed))

    ref = reference_forward(x, params)
    assert out.shape == (B, NUM_CLASSES)
    assert jnp.allclose(out, ref, rtol=1e-3, atol=1e-3), "mismatch vs reference"

    print("KERNEL_OK")
</pallas_src>

<mosaic_0001>
module attributes {stable_mosaic.version = 11 : i64} {
  func.func @_motion_kernel(%arg0: memref<64x48xf32, #tpu.memory_space<vmem>>, %arg1: memref<216x128xf32, #tpu.memory_space<vmem>>, %arg2: memref<8x128xf32, #tpu.memory_space<vmem>>) attributes {dimension_semantics = [], scalar_prefetch = 0 : i64, scratch_operands = 0 : i64, tpu.core_type = #tpu.core_type<tc>} {
    %c0 = arith.constant 0 : index
    %c0_0 = arith.constant 0 : index
    %0 = vector.load %arg1[%c0, %c0_0] : memref<216x128xf32, #tpu.memory_space<vmem>>, vector<48x128xf32>
    %c48 = arith.constant 48 : index
    %c0_1 = arith.constant 0 : index
    %1 = vector.load %arg1[%c48, %c0_1] : memref<216x128xf32, #tpu.memory_space<vmem>>, vector<32x128xf32>
    %c80 = arith.constant 80 : index
    %c0_2 = arith.constant 0 : index
    %2 = vector.load %arg1[%c80, %c0_2] : memref<216x128xf32, #tpu.memory_space<vmem>>, vector<32x128xf32>
    %c112 = arith.constant 112 : index
    %c0_3 = arith.constant 0 : index
    %3 = vector.load %arg1[%c112, %c0_3] : memref<216x128xf32, #tpu.memory_space<vmem>>, vector<32x128xf32>
    %c144 = arith.constant 144 : index
    %c0_4 = arith.constant 0 : index
    %4 = vector.load %arg1[%c144, %c0_4] : memref<216x128xf32, #tpu.memory_space<vmem>>, vector<1x128xf32>
    %c152 = arith.constant 152 : index
    %c0_5 = arith.constant 0 : index
    %5 = vector.load %arg1[%c152, %c0_5] : memref<216x128xf32, #tpu.memory_space<vmem>>, vector<1x128xf32>
    %c0_6 = arith.constant 0 : index
    %c0_7 = arith.constant 0 : index
    %6 = vector.load %arg0[%c0_6, %c0_7] : memref<64x48xf32, #tpu.memory_space<vmem>>, vector<64x48xf32>
    %cst = arith.constant dense<0.000000e+00> : vector<64x128xf32>
    %7 = tpu.matmul %6, %0, %cst {dimension_numbers = #tpu.dot_dimension_numbers<[1], [0], [0], [1], [0, 0, 1, 1], [], []>} : vector<64x48xf32>, vector<48x128xf32>, vector<64x128xf32> -> vector<64x128xf32>
    %8 = vector.broadcast %4 : vector<1x128xf32> to vector<64x128xf32>
    %9 = arith.addf %7, %8 : vector<64x128xf32>
    %cst_8 = arith.constant 0.000000e+00 : f32
    %10 = vector.broadcast %cst_8 : f32 to vector<8x32xf32>
    %cst_9 = arith.constant 0.000000e+00 : f32
    %11 = vector.broadcast %cst_9 : f32 to vector<8x32xf32>
    %cst_10 = arith.constant 0.000000e+00 : f32
    %12 = vector.broadcast %cst_10 : f32 to vector<8x32xf32>
    %cst_11 = arith.constant 0.000000e+00 : f32
    %13 = vector.broadcast %cst_11 : f32 to vector<8x32xf32>
    %cst_12 = arith.constant dense<0.000000e+00> : vector<8x128xf32>
    %14 = tpu.matmul %10, %1, %cst_12 {dimension_numbers = #tpu.dot_dimension_numbers<[1], [0], [0], [1], [0, 0, 1, 1], [], []>} : vector<8x32xf32>, vector<32x128xf32>, vector<8x128xf32> -> vector<8x128xf32>
    %cst_13 = arith.constant dense<0.000000e+00> : vector<8x128xf32>
    %15 = tpu.matmul %12, %3, %cst_13 {dimension_numbers = #tpu.dot_dimension_numbers<[1], [0], [0], [1], [0, 0, 1, 1], [], []>} : vector<8x32xf32>, vector<32x128xf32>, vector<8x128xf32> -> vector<8x128xf32>
    %16 = vector.extract_strided_slice %9 {offsets = [0, 0], sizes = [8, 128], strides = [1, 1]} : vector<64x128xf32> to vector<8x128xf32>
    %17 = arith.addf %16, %14 : vector<8x128xf32>
    %18 = arith.negf %17 : vector<8x128xf32>
    %19 = math.exp %18 : vector<8x128xf32>
    %cst_14 = arith.constant 1.000000e+00 : f32
    %20 = vector.broadcast %cst_14 : f32 to vector<8x128xf32>
    %21 = arith.addf %20, %19 : vector<8x128xf32>
    %22 = arith.divf %20, %21 : vector<8x128xf32>
    %23 = vector.extract_strided_slice %22 {offsets = [0, 0], sizes = [8, 32], strides = [1, 1]} : vector<8x128xf32> to vector<8x32xf32>
    %24 = vector.extract_strided_slice %22 {offsets = [0, 32], sizes = [8, 32], strides = [1, 1]} : vector<8x128xf32> to vector<8x32xf32>
    %25 = vector.extract_strided_slice %22 {offsets = [0, 96], sizes = [8, 32], strides = [1, 1]} : vector<8x128xf32> to vector<8x32xf32>
    %26 = vector.extract_strided_slice %17 {offsets = [0, 64], sizes = [8, 32], strides = [1, 1]} : vector<8x128xf32> to vector<8x32xf32>
    %27 = math.tanh %26 : vector<8x32xf32>
    %28 = arith.mulf %24, %11 : vector<8x32xf32>
    %29 = arith.mulf %23, %27 : vector<8x32xf32>
    %30 = arith.addf %28, %29 : vector<8x32xf32>
    %31 = math.tanh %30 : vector<8x32xf32>
    %32 = arith.mulf %25, %31 : vector<8x32xf32>
    %cst_15 = arith.constant dense<0.000000e+00> : vector<8x128xf32>
    %33 = tpu.matmul %32, %2, %cst_15 {dimension_numbers = #tpu.dot_dimension_numbers<[1], [0], [0], [1], [0, 0, 1, 1], [], []>} : vector<8x32xf32>, vector<32x128xf32>, vector<8x128xf32> -> vector<8x128xf32>
    %34 = arith.addf %33, %15 : vector<8x128xf32>
    %35 = vector.broadcast %5 : vector<1x128xf32> to vector<8x128xf32>
    %36 = arith.addf %34, %35 : vector<8x128xf32>
    %37 = arith.negf %36 : vector<8x128xf32>
    %38 = math.exp %37 : vector<8x128xf32>
    %cst_16 = arith.constant 1.000000e+00 : f32
    %39 = vector.broadcast %cst_16 : f32 to vector<8x128xf32>
    %40 = arith.addf %39, %38 : vector<8x128xf32>
    %41 = arith.divf %39, %40 : vector<8x128xf32>
    %42 = vector.extract_strided_slice %41 {offsets = [0, 0], sizes = [8, 32], strides = [1, 1]} : vector<8x128xf32> to vector<8x32xf32>
    %43 = vector.extract_strided_slice %41 {offsets = [0, 32], sizes = [8, 32], strides = [1, 1]} : vector<8x128xf32> to vector<8x32xf32>
    %44 = vector.extract_strided_slice %41 {offsets = [0, 96], sizes = [8, 32], strides = [1, 1]} : vector<8x128xf32> to vector<8x32xf32>
    %45 = vector.extract_strided_slice %36 {offsets = [0, 64], sizes = [8, 32], strides = [1, 1]} : vector<8x128xf32> to vector<8x32xf32>
    %46 = math.tanh %45 : vector<8x32xf32>
    %47 = arith.mulf %43, %13 : vector<8x32xf32>
    %48 = arith.mulf %42, %46 : vector<8x32xf32>
    %49 = arith.addf %47, %48 : vector<8x32xf32>
    %50 = math.tanh %49 : vector<8x32xf32>
    %51 = arith.mulf %44, %50 : vector<8x32xf32>
    %cst_17 = arith.constant dense<0.000000e+00> : vector<8x128xf32>
    %52 = tpu.matmul %32, %1, %cst_17 {dimension_numbers = #tpu.dot_dimension_numbers<[1], [0], [0], [1], [0, 0, 1, 1], [], []>} : vector<8x32xf32>, vector<32x128xf32>, vector<8x128xf32> -> vector<8x128xf32>
    %cst_18 = arith.constant dense<0.000000e+00> : vector<8x128xf32>
    %53 = tpu.matmul %51, %3, %cst_18 {dimension_numbers = #tpu.dot_dimension_numbers<[1], [0], [0], [1], [0, 0, 1, 1], [], []>} : vector<8x32xf32>, vector<32x128xf32>, vector<8x128xf32> -> vector<8x128xf32>
    %54 = vector.extract_strided_slice %9 {offsets = [8, 0], sizes = [8, 128], strides = [1, 1]} : vector<64x128xf32> to vector<8x128xf32>
    %55 = arith.addf %54, %52 : vector<8x128xf32>
    %56 = arith.negf %55 : vector<8x128xf32>
    %57 = math.exp %56 : vector<8x128xf32>
    %cst_19 = arith.constant 1.000000e+00 : f32
    %58 = vector.broadcast %cst_19 : f32 to vector<8x128xf32>
    %59 = arith.addf %58, %57 : vector<8x128xf32>
    %60 = arith.divf %58, %59 : vector<8x128xf32>
    %61 = vector.extract_strided_slice %60 {offsets = [0, 0], sizes = [8, 32], strides = [1, 1]} : vector<8x128xf32> to vector<8x32xf32>
    %62 = vector.extract_strided_slice %60 {offsets = [0, 32], sizes = [8, 32], strides = [1, 1]} : vector<8x128xf32> to vector<8x32xf32>
    %63 = vector.extract_strided_slice %60 {offsets = [0, 96], sizes = [8, 32], strides = [1, 1]} : vector<8x128xf32> to vector<8x32xf32>
    %64 = vector.extract_strided_slice %55 {offsets = [0, 64], sizes = [8, 32], strides = [1, 1]} : vector<8x128xf32> to vector<8x32xf32>
    %65 = math.tanh %64 : vector<8x32xf32>
    %66 = arith.mulf %62, %30 : vector<8x32xf32>
    %67 = arith.mulf %61, %65 : vector<8x32xf32>
    %68 = arith.addf %66, %67 : vector<8x32xf32>
    %69 = math.tanh %68 : vector<8x32xf32>
    %70 = arith.mulf %63, %69 : vector<8x32xf32>
    %cst_20 = arith.constant dense<0.000000e+00> : vector<8x128xf32>
    %71 = tpu.matmul %70, %2, %cst_20 {dimension_numbers = #tpu.dot_dimension_numbers<[1], [0], [0], [1], [0, 0, 1, 1], [], []>} : vector<8x32xf32>, vector<32x128xf32>, vector<8x128xf32> -> vector<8x128xf32>
    %72 = arith.addf %71, %53 : vector<8x128xf32>
    %73 = vector.broadcast %5 : vector<1x128xf32> to vector<8x128xf32>
    %74 = arith.addf %72, %73 : vector<8x128xf32>
    %75 = arith.negf %74 : vector<8x128xf32>
    %76 = math.exp %75 : vector<8x128xf32>
    %cst_21 = arith.constant 1.000000e+00 : f32
    %77 = vector.broadcast %cst_21 : f32 to vector<8x128xf32>
    %78 = arith.addf %77, %76 : vector<8x128xf32>
    %79 = arith.divf %77, %78 : vector<8x128xf32>
    %80 = vector.extract_strided_slice %79 {offsets = [0, 0], sizes = [8, 32], strides = [1, 1]} : vector<8x128xf32> to vector<8x32xf32>
    %81 = vector.extract_strided_slice %79 {offsets = [0, 32], sizes = [8, 32], strides = [1, 1]} : vector<8x128xf32> to vector<8x32xf32>
    %82 = vector.extract_strided_slice %79 {offsets = [0, 96], sizes = [8, 32], strides = [1, 1]} : vector<8x128xf32> to vector<8x32xf32>
    %83 = vector.extract_strided_slice %74 {offsets = [0, 64], sizes = [8, 32], strides = [1, 1]} : vector<8x128xf32> to vector<8x32xf32>
    %84 = math.tanh %83 : vector<8x32xf32>
    %85 = arith.mulf %81, %49 : vector<8x32xf32>
    %86 = arith.mulf %80, %84 : vector<8x32xf32>
    %87 = arith.addf %85, %86 : vector<8x32xf32>
    %88 = math.tanh %87 : vector<8x32xf32>
    %89 = arith.mulf %82, %88 : vector<8x32xf32>
    %cst_22 = arith.constant dense<0.000000e+00> : vector<8x128xf32>
    %90 = tpu.matmul %70, %1, %cst_22 {dimension_numbers = #tpu.dot_dimension_numbers<[1], [0], [0], [1], [0, 0, 1, 1], [], []>} : vector<8x32xf32>, vector<32x128xf32>, vector<8x128xf32> -> vector<8x128xf32>
    %cst_23 = arith.constant dense<0.000000e+00> : vector<8x128xf32>
    %91 = tpu.matmul %89, %3, %cst_23 {dimension_numbers = #tpu.dot_dimension_numbers<[1], [0], [0], [1], [0, 0, 1, 1], [], []>} : vector<8x32xf32>, vector<32x128xf32>, vector<8x128xf32> -> vector<8x128xf32>
    %92 = vector.extract_strided_slice %9 {offsets = [16, 0], sizes = [8, 128], strides = [1, 1]} : vector<64x128xf32> to vector<8x128xf32>
    %93 = arith.addf %92, %90 : vector<8x128xf32>
    %94 = arith.negf %93 : vector<8x128xf32>
    %95 = math.exp %94 : vector<8x128xf32>
    %cst_24 = arith.constant 1.000000e+00 : f32
    %96 = vector.broadcast %cst_24 : f32 to vector<8x128xf32>
    %97 = arith.addf %96, %95 : vector<8x128xf32>
    %98 = arith.divf %96, %97 : vector<8x128xf32>
    %99 = vector.extract_strided_slice %98 {offsets = [0, 0], sizes = [8, 32], strides = [1, 1]} : vector<8x128xf32> to vector<8x32xf32>
    %100 = vector.extract_strided_slice %98 {offsets = [0, 32], sizes = [8, 32], strides = [1, 1]} : vector<8x128xf32> to vector<8x32xf32>
    %101 = vector.extract_strided_slice %98 {offsets = [0, 96], sizes = [8, 32], strides = [1, 1]} : vector<8x128xf32> to vector<8x32xf32>
    %102 = vector.extract_strided_slice %93 {offsets = [0, 64], sizes = [8, 32], strides = [1, 1]} : vector<8x128xf32> to vector<8x32xf32>
    %103 = math.tanh %102 : vector<8x32xf32>
    %104 = arith.mulf %100, %68 : vector<8x32xf32>
    %105 = arith.mulf %99, %103 : vector<8x32xf32>
    %106 = arith.addf %104, %105 : vector<8x32xf32>
    %107 = math.tanh %106 : vector<8x32xf32>
    %108 = arith.mulf %101, %107 : vector<8x32xf32>
    %cst_25 = arith.constant dense<0.000000e+00> : vector<8x128xf32>
    %109 = tpu.matmul %108, %2, %cst_25 {dimension_numbers = #tpu.dot_dimension_numbers<[1], [0], [0], [1], [0, 0, 1, 1], [], []>} : vector<8x32xf32>, vector<32x128xf32>, vector<8x128xf32> -> vector<8x128xf32>
    %110 = arith.addf %109, %91 : vector<8x128xf32>
    %111 = vector.broadcast %5 : vector<1x128xf32> to vector<8x128xf32>
    %112 = arith.addf %110, %111 : vector<8x128xf32>
    %113 = arith.negf %112 : vector<8x128xf32>
    %114 = math.exp %113 : vector<8x128xf32>
    %cst_26 = arith.constant 1.000000e+00 : f32
    %115 = vector.broadcast %cst_26 : f32 to vector<8x128xf32>
    %116 = arith.addf %115, %114 : vector<8x128xf32>
    %117 = arith.divf %115, %116 : vector<8x128xf32>
    %118 = vector.extract_strided_slice %117 {offsets = [0, 0], sizes = [8, 32], strides = [1, 1]} : vector<8x128xf32> to vector<8x32xf32>
    %119 = vector.extract_strided_slice %117 {offsets = [0, 32], sizes = [8, 32], strides = [1, 1]} : vector<8x128xf32> to vector<8x32xf32>
    %120 = vector.extract_strided_slice %117 {offsets = [0, 96], sizes = [8, 32], strides = [1, 1]} : vector<8x128xf32> to vector<8x32xf32>
    %121 = vector.extract_strided_slice %112 {offsets = [0, 64], sizes = [8, 32], strides = [1, 1]} : vector<8x128xf32> to vector<8x32xf32>
    %122 = math.tanh %121 : vector<8x32xf32>
    %123 = arith.mulf %119, %87 : vector<8x32xf32>
    %124 = arith.mulf %118, %122 : vector<8x32xf32>
    %125 = arith.addf %123, %124 : vector<8x32xf32>
    %126 = math.tanh %125 : vector<8x32xf32>
    %127 = arith.mulf %120, %126 : vector<8x32xf32>
    %cst_27 = arith.constant dense<0.000000e+00> : vector<8x128xf32>
    %128 = tpu.matmul %108, %1, %cst_27 {dimension_numbers = #tpu.dot_dimension_numbers<[1], [0], [0], [1], [0, 0, 1, 1], [], []>} : vector<8x32xf32>, vector<32x128xf32>, vector<8x128xf32> -> vector<8x128xf32>
    %cst_28 = arith.constant dense<0.000000e+00> : vector<8x128xf32>
    %129 = tpu.matmul %127, %3, %cst_28 {dimension_numbers = #tpu.dot_dimension_numbers<[1], [0], [0], [1], [0, 0, 1, 1], [], []>} : vector<8x32xf32>, vector<32x128xf32>, vector<8x128xf32> -> vector<8x128xf32>
    %130 = vector.extract_strided_slice %9 {offsets = [24, 0], sizes = [8, 128], strides = [1, 1]} : vector<64x128xf32> to vector<8x128xf32>
    %131 = arith.addf %130, %128 : vector<8x128xf32>
    %132 = arith.negf %131 : vector<8x128xf32>
    %133 = math.exp %132 : vector<8x128xf32>
    %cst_29 = arith.constant 1.000000e+00 : f32
    %134 = vector.broadcast %cst_29 : f32 to vector<8x128xf32>
    %135 = arith.addf %134, %133 : vector<8x128xf32>
    %136 = arith.divf %134, %135 : vector<8x128xf32>
    %137 = vector.extract_strided_slice %136 {offsets = [0, 0], sizes = [8, 32], strides = [1, 1]} : vector<8x128xf32> to vector<8x32xf32>
    %138 = vector.extract_strided_slice %136 {offsets = [0, 32], sizes = [8, 32], strides = [1, 1]} : vector<8x128xf32> to vector<8x32xf32>
    %139 = vector.extract_strided_slice %136 {offsets = [0, 96], sizes = [8, 32], strides = [1, 1]} : vector<8x128xf32> to vector<8x32xf32>
    %140 = vector.extract_strided_slice %131 {offsets = [0, 64], sizes = [8, 32], strides = [1, 1]} : vector<8x128xf32> to vector<8x32xf32>
    %141 = math.tanh %140 : vector<8x32xf32>
    %142 = arith.mulf %138, %106 : vector<8x32xf32>
    %143 = arith.mulf %137, %141 : vector<8x32xf32>
    %144 = arith.addf %142, %143 : vector<8x32xf32>
    %145 = math.tanh %144 : vector<8x32xf32>
    %146 = arith.mulf %139, %145 : vector<8x32xf32>
    %cst_30 = arith.constant dense<0.000000e+00> : vector<8x128xf32>
    %147 = tpu.matmul %146, %2, %cst_30 {dimension_numbers = #tpu.dot_dimension_numbers<[1], [0], [0], [1], [0, 0, 1, 1], [], []>} : vector<8x32xf32>, vector<32x128xf32>, vector<8x128xf32> -> vector<8x128xf32>
    %148 = arith.addf %147, %129 : vector<8x128xf32>
    %149 = vector.broadcast %5 : vector<1x128xf32> to vector<8x128xf32>
    %150 = arith.addf %148, %149 : vector<8x128xf32>
    %151 = arith.negf %150 : vector<8x128xf32>
    %152 = math.exp %151 : vector<8x128xf32>
    %cst_31 = arith.constant 1.000000e+00 : f32
    %153 = vector.broadcast %cst_31 : f32 to vector<8x128xf32>
    %154 = arith.addf %153, %152 : vector<8x128xf32>
    %155 = arith.divf %153, %154 : vector<8x128xf32>
    %156 = vector.extract_strided_slice %155 {offsets = [0, 0], sizes = [8, 32], strides = [1, 1]} : vector<8x128xf32> to vector<8x32xf32>
    %157 = vector.extract_strided_slice %155 {offsets = [0, 32], sizes = [8, 32], strides = [1, 1]} : vector<8x128xf32> to vector<8x32xf32>
    %158 = vector.extract_strided_slice %155 {offsets = [0, 96], sizes = [8, 32], strides = [1, 1]} : vector<8x128xf32> to vector<8x32xf32>
    %159 = vector.extract_strided_slice %150 {offsets = [0, 64], sizes = [8, 32], strides = [1, 1]} : vector<8x128xf32> to vector<8x32xf32>
    %160 = math.tanh %159 : vector<8x32xf32>
    %161 = arith.mulf %157, %125 : vector<8x32xf32>
    %162 = arith.mulf %156, %160 : vector<8x32xf32>
    %163 = arith.addf %161, %162 : vector<8x32xf32>
    %164 = math.tanh %163 : vector<8x32xf32>
    %165 = arith.mulf %158, %164 : vector<8x32xf32>
    %cst_32 = arith.constant dense<0.000000e+00> : vector<8x128xf32>
    %166 = tpu.matmul %146, %1, %cst_32 {dimension_numbers = #tpu.dot_dimension_numbers<[1], [0], [0], [1], [0, 0, 1, 1], [], []>} : vector<8x32xf32>, vector<32x128xf32>, vector<8x128xf32> -> vector<8x128xf32>
    %cst_33 = arith.constant dense<0.000000e+00> : vector<8x128xf32>
    %167 = tpu.matmul %165, %3, %cst_33 {dimension_numbers = #tpu.dot_dimension_numbers<[1], [0], [0], [1], [0, 0, 1, 1], [], []>} : vector<8x32xf32>, vector<32x128xf32>, vector<8x128xf32> -> vector<8x128xf32>
    %168 = vector.extract_strided_slice %9 {offsets = [32, 0], sizes = [8, 128], strides = [1, 1]} : vector<64x128xf32> to vector<8x128xf32>
    %169 = arith.addf %168, %166 : vector<8x128xf32>
    %170 = arith.negf %169 : vector<8x128xf32>
    %171 = math.exp %170 : vector<8x128xf32>
    %cst_34 = arith.constant 1.000000e+00 : f32
    %172 = vector.broadcast %cst_34 : f32 to vector<8x128xf32>
    %173 = arith.addf %172, %171 : vector<8x128xf32>
    %174 = arith.divf %172, %173 : vector<8x128xf32>
    %175 = vector.extract_strided_slice %174 {offsets = [0, 0], sizes = [8, 32], strides = [1, 1]} : vector<8x128xf32> to vector<8x32xf32>
    %176 = vector.extract_strided_slice %174 {offsets = [0, 32], sizes = [8, 32], strides = [1, 1]} : vector<8x128xf32> to vector<8x32xf32>
    %177 = vector.extract_strided_slice %174 {offsets = [0, 96], sizes = [8, 32], strides = [1, 1]} : vector<8x128xf32> to vector<8x32xf32>
    %178 = vector.extract_strided_slice %169 {offsets = [0, 64], sizes = [8, 32], strides = [1, 1]} : vector<8x128xf32> to vector<8x32xf32>
    %179 = math.tanh %178 : vector<8x32xf32>
    %180 = arith.mulf %176, %144 : vector<8x32xf32>
    %181 = arith.mulf %175, %179 : vector<8x32xf32>
    %182 = arith.addf %180, %181 : vector<8x32xf32>
    %183 = math.tanh %182 : vector<8x32xf32>
    %184 = arith.mulf %177, %183 : vector<8x32xf32>
    %cst_35 = arith.constant dense<0.000000e+00> : vector<8x128xf32>
    %185 = tpu.matmul %184, %2, %cst_35 {dimension_numbers = #tpu.dot_dimension_numbers<[1], [0], [0], [1], [0, 0, 1, 1], [], []>} : vector<8x32xf32>, vector<32x128xf32>, vector<8x128xf32> -> vector<8x128xf32>
    %186 = arith.addf %185, %167 : vector<8x128xf32>
    %187 = vector.broadcast %5 : vector<1x128xf32> to vector<8x128xf32>
    %188 = arith.addf %186, %187 : vector<8x128xf32>
    %189 = arith.negf %188 : vector<8x128xf32>
    %190 = math.exp %189 : vector<8x128xf32>
    %cst_36 = arith.constant 1.000000e+00 : f32
    %191 = vector.broadcast %cst_36 : f32 to vector<8x128xf32>
    %192 = arith.addf %191, %190 : vector<8x128xf32>
    %193 = arith.divf %191, %192 : vector<8x128xf32>
    %194 = vector.extract_strided_slice %193 {offsets = [0, 0], sizes = [8, 32], strides = [1, 1]} : vector<8x128xf32> to vector<8x32xf32>
    %195 = vector.extract_strided_slice %193 {offsets = [0, 32], sizes = [8, 32], strides = [1, 1]} : vector<8x128xf32> to vector<8x32xf32>
    %196 = vector.extract_strided_slice %193 {offsets = [0, 96], sizes = [8, 32], strides = [1, 1]} : vector<8x128xf32> to vector<8x32xf32>
    %197 = vector.extract_strided_slice %188 {offsets = [0, 64], sizes = [8, 32], strides = [1, 1]} : vector<8x128xf32> to vector<8x32xf32>
    %198 = math.tanh %197 : vector<8x32xf32>
    %199 = arith.mulf %195, %163 : vector<8x32xf32>
    %200 = arith.mulf %194, %198 : vector<8x32xf32>
    %201 = arith.addf %199, %200 : vector<8x32xf32>
    %202 = math.tanh %201 : vector<8x32xf32>
    %203 = arith.mulf %196, %202 : vector<8x32xf32>
    %cst_37 = arith.constant dense<0.000000e+00> : vector<8x128xf32>
    %204 = tpu.matmul %184, %1, %cst_37 {dimension_numbers = #tpu.dot_dimension_numbers<[1], [0], [0], [1], [0, 0, 1, 1], [], []>} : vector<8x32xf32>, vector<32x128xf32>, vector<8x128xf32> -> vector<8x128xf32>
    %cst_38 = arith.constant dense<0.000000e+00> : vector<8x128xf32>
    %205 = tpu.matmul %203, %3, %cst_38 {dimension_numbers = #tpu.dot_dimension_numbers<[1], [0], [0], [1], [0, 0, 1, 1], [], []>} : vector<8x32xf32>, vector<32x128xf32>, vector<8x128xf32> -> vector<8x128xf32>
    %206 = vector.extract_strided_slice %9 {offsets = [40, 0], sizes = [8, 128], strides = [1, 1]} : vector<64x128xf32> to vector<8x128xf32>
    %207 = arith.addf %206, %204 : vector<8x128xf32>
    %208 = arith.negf %207 : vector<8x128xf32>
    %209 = math.exp %208 : vector<8x128xf32>
    %cst_39 = arith.constant 1.000000e+00 : f32
    %210 = vector.broadcast %cst_39 : f32 to vector<8x128xf32>
    %211 = arith.addf %210, %209 : vector<8x128xf32>
    %212 = arith.divf %210, %211 : vector<8x128xf32>
    %213 = vector.extract_strided_slice %212 {offsets = [0, 0], sizes = [8, 32], strides = [1, 1]} : vector<8x128xf32> to vector<8x32xf32>
    %214 = vector.extract_strided_slice %212 {offsets = [0, 32], sizes = [8, 32], strides = [1, 1]} : vector<8x128xf32> to vector<8x32xf32>
    %215 = vector.extract_strided_slice %212 {offsets = [0, 96], sizes = [8, 32], strides = [1, 1]} : vector<8x128xf32> to vector<8x32xf32>
    %216 = vector.extract_strided_slice %207 {offsets = [0, 64], sizes = [8, 32], strides = [1, 1]} : vector<8x128xf32> to vector<8x32xf32>
    %217 = math.tanh %216 : vector<8x32xf32>
    %218 = arith.mulf %214, %182 : vector<8x32xf32>
    %219 = arith.mulf %213, %217 : vector<8x32xf32>
    %220 = arith.addf %218, %219 : vector<8x32xf32>
    %221 = math.tanh %220 : vector<8x32xf32>
    %222 = arith.mulf %215, %221 : vector<8x32xf32>
    %cst_40 = arith.constant dense<0.000000e+00> : vector<8x128xf32>
    %223 = tpu.matmul %222, %2, %cst_40 {dimension_numbers = #tpu.dot_dimension_numbers<[1], [0], [0], [1], [0, 0, 1, 1], [], []>} : vector<8x32xf32>, vector<32x128xf32>, vector<8x128xf32> -> vector<8x128xf32>
    %224 = arith.addf %223, %205 : vector<8x128xf32>
    %225 = vector.broadcast %5 : vector<1x128xf32> to vector<8x128xf32>
    %226 = arith.addf %224, %225 : vector<8x128xf32>
    %227 = arith.negf %226 : vector<8x128xf32>
    %228 = math.exp %227 : vector<8x128xf32>
    %cst_41 = arith.constant 1.000000e+00 : f32
    %229 = vector.broadcast %cst_41 : f32 to vector<8x128xf32>
    %230 = arith.addf %229, %228 : vector<8x128xf32>
    %231 = arith.divf %229, %230 : vector<8x128xf32>
    %232 = vector.extract_strided_slice %231 {offsets = [0, 0], sizes = [8, 32], strides = [1, 1]} : vector<8x128xf32> to vector<8x32xf32>
    %233 = vector.extract_strided_slice %231 {offsets = [0, 32], sizes = [8, 32], strides = [1, 1]} : vector<8x128xf32> to vector<8x32xf32>
    %234 = vector.extract_strided_slice %231 {offsets = [0, 96], sizes = [8, 32], strides = [1, 1]} : vector<8x128xf32> to vector<8x32xf32>
    %235 = vector.extract_strided_slice %226 {offsets = [0, 64], sizes = [8, 32], strides = [1, 1]} : vector<8x128xf32> to vector<8x32xf32>
    %236 = math.tanh %235 : vector<8x32xf32>
    %237 = arith.mulf %233, %201 : vector<8x32xf32>
    %238 = arith.mulf %232, %236 : vector<8x32xf32>
    %239 = arith.addf %237, %238 : vector<8x32xf32>
    %240 = math.tanh %239 : vector<8x32xf32>
    %241 = arith.mulf %234, %240 : vector<8x32xf32>
    %cst_42 = arith.constant dense<0.000000e+00> : vector<8x128xf32>
    %242 = tpu.matmul %222, %1, %cst_42 {dimension_numbers = #tpu.dot_dimension_numbers<[1], [0], [0], [1], [0, 0, 1, 1], [], []>} : vector<8x32xf32>, vector<32x128xf32>, vector<8x128xf32> -> vector<8x128xf32>
    %cst_43 = arith.constant dense<0.000000e+00> : vector<8x128xf32>
    %243 = tpu.matmul %241, %3, %cst_43 {dimension_numbers = #tpu.dot_dimension_numbers<[1], [0], [0], [1], [0, 0, 1, 1], [], []>} : vector<8x32xf32>, vector<32x128xf32>, vector<8x128xf32> -> vector<8x128xf32>
    %244 = vector.extract_strided_slice %9 {offsets = [48, 0], sizes = [8, 128], strides = [1, 1]} : vector<64x128xf32> to vector<8x128xf32>
    %245 = arith.addf %244, %242 : vector<8x128xf32>
    %246 = arith.negf %245 : vector<8x128xf32>
    %247 = math.exp %246 : vector<8x128xf32>
    %cst_44 = arith.constant 1.000000e+00 : f32
    %248 = vector.broadcast %cst_44 : f32 to vector<8x128xf32>
    %249 = arith.addf %248, %247 : vector<8x128xf32>
    %250 = arith.divf %248, %249 : vector<8x128xf32>
    %251 = vector.extract_strided_slice %250 {offsets = [0, 0], sizes = [8, 32], strides = [1, 1]} : vector<8x128xf32> to vector<8x32xf32>
    %252 = vector.extract_strided_slice %250 {offsets = [0, 32], sizes = [8, 32], strides = [1, 1]} : vector<8x128xf32> to vector<8x32xf32>
    %253 = vector.extract_strided_slice %250 {offsets = [0, 96], sizes = [8, 32], strides = [1, 1]} : vector<8x128xf32> to vector<8x32xf32>
    %254 = vector.extract_strided_slice %245 {offsets = [0, 64], sizes = [8, 32], strides = [1, 1]} : vector<8x128xf32> to vector<8x32xf32>
    %255 = math.tanh %254 : vector<8x32xf32>
    %256 = arith.mulf %252, %220 : vector<8x32xf32>
    %257 = arith.mulf %251, %255 : vector<8x32xf32>
    %258 = arith.addf %256, %257 : vector<8x32xf32>
    %259 = math.tanh %258 : vector<8x32xf32>
    %260 = arith.mulf %253, %259 : vector<8x32xf32>
    %cst_45 = arith.constant dense<0.000000e+00> : vector<8x128xf32>
    %261 = tpu.matmul %260, %2, %cst_45 {dimension_numbers = #tpu.dot_dimension_numbers<[1], [0], [0], [1], [0, 0, 1, 1], [], []>} : vector<8x32xf32>, vector<32x128xf32>, vector<8x128xf32> -> vector<8x128xf32>
    %262 = arith.addf %261, %243 : vector<8x128xf32>
    %263 = vector.broadcast %5 : vector<1x128xf32> to vector<8x128xf32>
    %264 = arith.addf %262, %263 : vector<8x128xf32>
    %265 = arith.negf %264 : vector<8x128xf32>
    %266 = math.exp %265 : vector<8x128xf32>
    %cst_46 = arith.constant 1.000000e+00 : f32
    %267 = vector.broadcast %cst_46 : f32 to vector<8x128xf32>
    %268 = arith.addf %267, %266 : vector<8x128xf32>
    %269 = arith.divf %267, %268 : vector<8x128xf32>
    %270 = vector.extract_strided_slice %269 {offsets = [0, 0], sizes = [8, 32], strides = [1, 1]} : vector<8x128xf32> to vector<8x32xf32>
    %271 = vector.extract_strided_slice %269 {offsets = [0, 32], sizes = [8, 32], strides = [1, 1]} : vector<8x128xf32> to vector<8x32xf32>
    %272 = vector.extract_strided_slice %269 {offsets = [0, 96], sizes = [8, 32], strides = [1, 1]} : vector<8x128xf32> to vector<8x32xf32>
    %273 = vector.extract_strided_slice %264 {offsets = [0, 64], sizes = [8, 32], strides = [1, 1]} : vector<8x128xf32> to vector<8x32xf32>
    %274 = math.tanh %273 : vector<8x32xf32>
    %275 = arith.mulf %271, %239 : vector<8x32xf32>
    %276 = arith.mulf %270, %274 : vector<8x32xf32>
    %277 = arith.addf %275, %276 : vector<8x32xf32>
    %278 = math.tanh %277 : vector<8x32xf32>
    %279 = arith.mulf %272, %278 : vector<8x32xf32>
    %cst_47 = arith.constant dense<0.000000e+00> : vector<8x128xf32>
    %280 = tpu.matmul %260, %1, %cst_47 {dimension_numbers = #tpu.dot_dimension_numbers<[1], [0], [0], [1], [0, 0, 1, 1], [], []>} : vector<8x32xf32>, vector<32x128xf32>, vector<8x128xf32> -> vector<8x128xf32>
    %cst_48 = arith.constant dense<0.000000e+00> : vector<8x128xf32>
    %281 = tpu.matmul %279, %3, %cst_48 {dimension_numbers = #tpu.dot_dimension_numbers<[1], [0], [0], [1], [0, 0, 1, 1], [], []>} : vector<8x32xf32>, vector<32x128xf32>, vector<8x128xf32> -> vector<8x128xf32>
    %282 = vector.extract_strided_slice %9 {offsets = [56, 0], sizes = [8, 128], strides = [1, 1]} : vector<64x128xf32> to vector<8x128xf32>
    %283 = arith.addf %282, %280 : vector<8x128xf32>
    %284 = arith.negf %283 : vector<8x128xf32>
    %285 = math.exp %284 : vector<8x128xf32>
    %cst_49 = arith.constant 1.000000e+00 : f32
    %286 = vector.broadcast %cst_49 : f32 to vector<8x128xf32>
    %287 = arith.addf %286, %285 : vector<8x128xf32>
    %288 = arith.divf %286, %287 : vector<8x128xf32>
    %289 = vector.extract_strided_slice %288 {offsets = [0, 0], sizes = [8, 32], strides = [1, 1]} : vector<8x128xf32> to vector<8x32xf32>
    %290 = vector.extract_strided_slice %288 {offsets = [0, 32], sizes = [8, 32], strides = [1, 1]} : vector<8x128xf32> to vector<8x32xf32>
    %291 = vector.extract_strided_slice %288 {offsets = [0, 96], sizes = [8, 32], strides = [1, 1]} : vector<8x128xf32> to vector<8x32xf32>
    %292 = vector.extract_strided_slice %283 {offsets = [0, 64], sizes = [8, 32], strides = [1, 1]} : vector<8x128xf32> to vector<8x32xf32>
    %293 = math.tanh %292 : vector<8x32xf32>
    %294 = arith.mulf %290, %258 : vector<8x32xf32>
    %295 = arith.mulf %289, %293 : vector<8x32xf32>
    %296 = arith.addf %294, %295 : vector<8x32xf32>
    %297 = math.tanh %296 : vector<8x32xf32>
    %298 = arith.mulf %291, %297 : vector<8x32xf32>
    %cst_50 = arith.constant dense<0.000000e+00> : vector<8x128xf32>
    %299 = tpu.matmul %298, %2, %cst_50 {dimension_numbers = #tpu.dot_dimension_numbers<[1], [0], [0], [1], [0, 0, 1, 1], [], []>} : vector<8x32xf32>, vector<32x128xf32>, vector<8x128xf32> -> vector<8x128xf32>
    %300 = arith.addf %299, %281 : vector<8x128xf32>
    %301 = vector.broadcast %5 : vector<1x128xf32> to vector<8x128xf32>
    %302 = arith.addf %300, %301 : vector<8x128xf32>
    %303 = arith.negf %302 : vector<8x128xf32>
    %304 = math.exp %303 : vector<8x128xf32>
    %cst_51 = arith.constant 1.000000e+00 : f32
    %305 = vector.broadcast %cst_51 : f32 to vector<8x128xf32>
    %306 = arith.addf %305, %304 : vector<8x128xf32>
    %307 = arith.divf %305, %306 : vector<8x128xf32>
    %308 = vector.extract_strided_slice %307 {offsets = [0, 0], sizes = [8, 32], strides = [1, 1]} : vector<8x128xf32> to vector<8x32xf32>
    %309 = vector.extract_strided_slice %307 {offsets = [0, 32], sizes = [8, 32], strides = [1, 1]} : vector<8x128xf32> to vector<8x32xf32>
    %310 = vector.extract_strided_slice %307 {offsets = [0, 96], sizes = [8, 32], strides = [1, 1]} : vector<8x128xf32> to vector<8x32xf32>
    %311 = vector.extract_strided_slice %302 {offsets = [0, 64], sizes = [8, 32], strides = [1, 1]} : vector<8x128xf32> to vector<8x32xf32>
    %312 = math.tanh %311 : vector<8x32xf32>
    %313 = arith.mulf %309, %277 : vector<8x32xf32>
    %314 = arith.mulf %308, %312 : vector<8x32xf32>
    %315 = arith.addf %313, %314 : vector<8x32xf32>
    %316 = math.tanh %315 : vector<8x32xf32>
    %317 = arith.mulf %310, %316 : vector<8x32xf32>
    %c160 = arith.constant 160 : index
    %c0_52 = arith.constant 0 : index
    %318 = vector.load %arg1[%c160, %c0_52] : memref<216x128xf32, #tpu.memory_space<vmem>>, vector<32x128xf32>
    %c192 = arith.constant 192 : index
    %c0_53 = arith.constant 0 : index
    %319 = vector.load %arg1[%c192, %c0_53] : memref<216x128xf32, #tpu.memory_space<vmem>>, vector<1x128xf32>
    %c200 = arith.constant 200 : index
    %c0_54 = arith.constant 0 : index
    %320 = vector.load %arg1[%c200, %c0_54] : memref<216x128xf32, #tpu.memory_space<vmem>>, vector<8x128xf32>
    %c208 = arith.constant 208 : index
    %c0_55 = arith.constant 0 : index
    %321 = vector.load %arg1[%c208, %c0_55] : memref<216x128xf32, #tpu.memory_space<vmem>>, vector<1x128xf32>
    %cst_56 = arith.constant dense<0.000000e+00> : vector<8x128xf32>
    %322 = tpu.matmul %317, %318, %cst_56 {dimension_numbers = #tpu.dot_dimension_numbers<[1], [0], [0], [1], [0, 0, 1, 1], [], []>} : vector<8x32xf32>, vector<32x128xf32>, vector<8x128xf32> -> vector<8x128xf32>
    %323 = vector.broadcast %319 : vector<1x128xf32> to vector<8x128xf32>
    %324 = arith.addf %322, %323 : vector<8x128xf32>
    %cst_57 = arith.constant 0.000000e+00 : f32
    %325 = vector.broadcast %cst_57 : f32 to vector<8x128xf32>
    %326 = arith.maximumf %324, %325 : vector<8x128xf32>
    %cst_58 = arith.constant dense<0.000000e+00> : vector<8x8xf32>
    %327 = tpu.matmul %326, %320, %cst_58 {dimension_numbers = #tpu.dot_dimension_numbers<[1], [1], [0], [0], [0, 0, 1, 0], [], []>} : vector<8x128xf32>, vector<8x128xf32>, vector<8x8xf32> -> vector<8x8xf32>
    %328 = vector.extract_strided_slice %321 {offsets = [0, 0], sizes = [1, 8], strides = [1, 1]} : vector<1x128xf32> to vector<1x8xf32>
    %329 = vector.broadcast %328 : vector<1x8xf32> to vector<8x8xf32>
    %330 = arith.addf %327, %329 : vector<8x8xf32>
    %cst_59 = arith.constant 0.000000e+00 : f32
    %331 = vector.broadcast %cst_59 : f32 to vector<8x120xf32>
    %332 = tpu.concatenate %330, %331 in 1 : vector<8x8xf32>, vector<8x120xf32> -> vector<8x128xf32>
    %c0_60 = arith.constant 0 : index
    %c0_61 = arith.constant 0 : index
    %333 = vector.load %arg2[%c0_60, %c0_61] : memref<8x128xf32, #tpu.memory_space<vmem>>, vector<8x128xf32>
    tpu.vector_store %arg2[%c0_60, %c0_61], %332 {strides = array<i32>} : memref<8x128xf32, #tpu.memory_space<vmem>>, vector<8x128xf32>,
    return
  }
}

</mosaic_0001>

<bundles_post_ra>
// kernel: motion_classifier_forward.1
= control target key start
LH: loop header
LB: loop body
LE: loop exit
PB: predicated region body
PF: predicated region fallthrough
CT: control target
= control target key end

     0   :  { %v3296_v3 = vmov 0.0|0.0   ;;  %vm43_vm0 = vcmask 392192   ;;  %vm3297_vm1 = vmmov 0   ;;  %v3298_v4 = vmov 0.0   ;;  %s3299_s7 = smov 64   ;;  %s3300_s8 = smov 32   ;;  %s3779_s1 = inlined_call_operand.vmem [shape: f32[216,128], index: 1, kind: input, shape index: {}]   ;;  %s3780_s0 = inlined_call_operand.vmem [shape: f32[64,48], index: 0, kind: input, shape index: {}]   ;;  %s3781_s2 = inlined_call_operand.vmem [shape: f32[8,128], index: 2, kind: output, shape index: {}]  }
   0x1   :  { %v11_v0 = vld [vmem:[%s3779_s1] sm:$0xff]  ;;  %v12_v1 = vld [vmem:[%s3779_s1 + $0x8] sm:$0xff]  ;;  %v13_v2 = vld [vmem:[%s3779_s1 + $0x10] sm:$0xff]  ;;  %3012 = vmatprep.subr.bf16.mxu1 %v3296_v3  ;;  %2728 = vmatprep.mubr.msk.f32.mxu1 %vm3297_vm1, %v3298_v4  ;;  %vm173_vm2 = vcmask 261120   ;;  %vm2497_vm3 = vcmask 64512  }
   0x2   :  { %v3000_v5 = vpack.c.bf16 %v12_v1, %v11_v0  ;;  %v14_v6 = vld [vmem:[%s3779_s1 + $0x18] sm:$0xff]  ;;  %v17_v7 = vld [vmem:[%s3779_s1 + $0x30] sm:$0xff]  ;;  %v15_v11 = vld [vmem:[%s3779_s1 + $0x20] sm:$0xff] }
   0x3   :  { %v18_v8 = vld [vmem:[%s3779_s1 + $0x38] sm:$0xff]  ;;  %v3004_v9 = vpack.c.bf16 %v14_v6, %v13_v2  ;;  %v16_v12 = vld [vmem:[%s3779_s1 + $0x28] sm:$0xff]  ;;  %v31_v13 = vld [vmem:[%s3780_s0] sm:$0xff] }
   0x4   :  { %v3337_v10 = vpack.c.bf16 %v18_v8, %v17_v7  ;;  %3001 = vmatprep.subr.bf16.mxu0 %v3000_v5  ;;  %2708 = vmatprep.mubr.msk.f32.mxu0 %vm43_vm0, %v31_v13  ;;  %v19_v14 = vld [vmem:[%s3779_s1 + $0x40] sm:$0xff]  ;;  %v20_v15 = vld [vmem:[%s3779_s1 + $0x48] sm:$0xff]  ;;  %v3008_v17 = vpack.c.bf16 %v16_v12, %v15_v11  ;;  %v3376_v21 = vld [vmem:[%s3779_s1 + $0x90] ss:$0 sm:$0xff] }
   0x5   :  { %3003 = vmatpush3.bf16.msra.mxu0 %v3000_v5  ;;  %v3356_v16 = vpack.c.bf16 %v20_v15, %v19_v14  ;;  %v32_v18 = vld [vmem:[%s3780_s0 + $0x8] sm:$0xff]  ;;  %v25_v36 = vld [vmem:[%s3779_s1 + $0x70] sm:$0xff]  ;;  %v26_v37 = vld [vmem:[%s3779_s1 + $0x78] sm:$0xff] }
   0x6   :  { %3014 = vmatpush3.bf16.msra.mxu1 %v3337_v10  ;;  %3005 = vmatprep.subr.bf16.mxu0 %v3004_v9  ;;  %v33_v38 = vld [vmem:[%s3780_s0 + $0x10] sm:$0xff]  ;;  %v3395_v39 = vpack.c.bf16 %v26_v37, %v25_v36  ;;  %v34_v40 = vld [vmem:[%s3780_s0 + $0x18] sm:$0xff]  ;;  %v27_v41 = vld [vmem:[%s3779_s1 + $0x80] sm:$0xff] }
   0x7   :  { %3015 = vmatprep.subr.bf16.mxu1 %v3296_v3  ;;  %v28_v42 = vld [vmem:[%s3779_s1 + $0x88] sm:$0xff]  ;;  %v35_v43 = vld [vmem:[%s3780_s0 + $0x20] sm:$0xff]  ;;  %v21_v46 = vld [vmem:[%s3779_s1 + $0x50] sm:$0xff] }
   0x8   :  { %v3412_v44 = vpack.c.bf16 %v28_v42, %v27_v41  ;;  %v36_v45 = vld [vmem:[%s3780_s0 + $0x28] sm:$0xff]  ;;  %v22_v47 = vld [vmem:[%s3779_s1 + $0x58] sm:$0xff]  ;;  %v37_v48 = vld [vmem:[%s3780_s0 + $0x30] sm:$0xff] }
   0x9   :  { %3007 = vmatpush3.bf16.msra.mxu0 %v3004_v9  ;;  %v3430_v49 = vpack.c.bf16 %v22_v47, %v21_v46  ;;  %v38_v50 = vld [vmem:[%s3780_s0 + $0x38] sm:$0xff]  ;;  %v23_v51 = vld [vmem:[%s3779_s1 + $0x60] sm:$0xff]  ;;  %v24_v52 = vld [vmem:[%s3779_s1 + $0x68] sm:$0xff] }
   0xa   :  { %3017 = vmatpush3.bf16.msra.mxu1 %v3356_v16  ;;  %3009 = vmatprep.subr.bf16.mxu0 %v3008_v17  ;;  %v3447_v54 = vpack.c.bf16 %v24_v52, %v23_v51  ;;  %v3488_v5 = vld [vmem:[%s3779_s1 + $0x98] ss:$0 sm:$0xff] }
   0xb   :  { %3018 = vmatprep.subr.bf16.mxu1 %v3296_v3 }
   0xd   :  { %2729 = vmatmul.mubr.f32.vlgmr.msra.gmra.mrb[0].mxu1 %v3298_v4  ;;  %3011 = vmatpush3.bf16.msra.mxu0 %v3008_v17 }
   0xe   :  { %2739 = vmatprep.mubr.msk.f32.mxu1 %vm3297_vm1, %v3298_v4  ;;  %3030 = vmatprep.subr.bf16.mxu0 %v3296_v3 }
   0xf   :  { %3020 = vmatpush3.bf16.msra.mxu1 %v3395_v39 }
  0x10   :  { %2709 = vmatmul.mubr.msk.f32.vlgmr.msra.gmra.mrb[0].mxu0 %vm43_vm0, %v32_v18  ;;  %3021 = vmatprep.subr.bf16.mxu1 %v3296_v3 }
  0x11   :  { %3032 = vmatpush3.bf16.msra.mxu0 %v3337_v10  ;;  %2711 = vmatprep.mubr.msk.f32.mxu0 %vm43_vm0, %v33_v38 }
  0x12   :  { %3033 = vmatprep.subr.bf16.mxu0 %v3296_v3 }
  0x13   :  { %3023 = vmatpush3.bf16.msra.mxu1 %v3412_v44 }
  0x14   :  { %2712 = vmatmul.mubr.msk.f32.gmra.mrb[2].mxu0 %vm43_vm0, %v34_v40  ;;  %3024 = vmatprep.subr.bf16.mxu1 %v3296_v3 }
  0x15   :  { %3035 = vmatpush3.bf16.msra.mxu0 %v3356_v16  ;;  %2714 = vmatprep.mubr.msk.f32.mxu0 %vm43_vm0, %v35_v43 }
  0x16   :  { %3042 = vmatprep.subr.bf16.mxu0 %v3296_v3  ;;  %2740 = vmatmul.mubr.f32.vlgmr.msra.gmra.mrb[2].mxu1 %v3298_v4 }
  0x17   :  { %3026 = vmatpush3.bf16.msra.mxu1 %v3430_v49  ;;  %2750 = vmatprep.mubr.msk.f32.mxu1 %vm3297_vm1, %v3298_v4 }
  0x18   :  { %2715 = vmatmul.mubr.msk.f32.gmra.mrb[4].mxu0 %vm43_vm0, %v36_v45  ;;  %3027 = vmatprep.subr.bf16.mxu1 %v3296_v3 }
  0x19   :  { %2717 = vmatprep.mubr.msk.f32.mxu0 %vm43_vm0, %v37_v48 }
  0x1b   :  { %3029 = vmatpush3.bf16.msra.mxu1 %v3447_v54 }
  0x1c   :  { %2718 = vmatmul.mubr.msk.f32.gmra.mrb[6].mxu0 %vm43_vm0, %v38_v50  ;;  %3036 = vmatprep.subr.bf16.mxu1 %v3296_v3 }
  0x1d   :  { %2761 = vmatprep.mubr.msk.f32.mxu0 %vm3297_vm1, %v3298_v4 }
  0xe0   :  { %v243_v19 = vpop.f32.mrb[0].mxu1 }
  0xe1   :  { %v2730_v20 = vpop.f32.mrb[1].mxu1 }
  0xe3   :  { %v3378_v22 = vpop.f32.mrb[0].mxu0 }
  0xe4   :  { %v134_v23 = vpop.f32.mrb[1].mxu0  ;;  %v140_v2 = vadd.f32 %v3378_v22, %v3376_v21 }
  0xe5   :  { %v135_v24 = vadd.f32 %v3376_v21, %v134_v23 }
  0xe7   :  { %v317_v25 = vadd.f32 %v243_v19, %v135_v24  ;;  %v3457_v57 = vpop.f32.mrb[2].mxu0 }
  0xe8   :  { %v3459_v58 = vpop.f32.mrb[3].mxu0 }
  0xe9   :  { %3167 = vtanh.f32 %v317_v25  ;;  %v2513_v27 = vmul.f32 -1.442695, %v317_v25  ;;  %v313_v61 = vpop.f32.mrb[2].mxu1 }
  0xea   :  { %v2741_v63 = vpop.f32.mrb[3].mxu1 }
  0xeb   :  { %3169 = vpow2.f32 %v2513_v27  ;;  %v3461_v59 = vpop.f32.mrb[4].mxu0 }
  0xec   :  { %v3463_v60 = vpop.f32.mrb[5].mxu0 }
  0xef   :  { %v3465_v62 = vpop.f32.mrb[6].mxu0 }
  0xf0   :  { %v3467_v0 = vpop.f32.mrb[7].mxu0 }
  0xf3   :  { %v3168_v26 = vpop.eup %3167 }
  0xf4   :  { %327 = vrot.lane.b32.xlu0 %v3168_v26, %s3299_s7 }
  0xf5   :  { %v3170_v28 = vpop.eup %3169 }
  0xf6   :  { %v321_v29 = vadd.f32 1.0, %v3170_v28 }
  0xf8   :  { %3171 = vrcp.f32 %v321_v29 }
 0x102   :  { %v3172_v30 = vpop.eup %3171 }
 0x103   :  { %v325_v33 = vmul.f32 0.0, %v3172_v30 }
 0x166   :  { %v328_v31 = vpop.permute.xlu0 %327 }
 0x167   :  { %v330_v32 = vmul.f32 %v3172_v30, %v328_v31 }
 0x169   :  { %332 = vrot.lane.b32.xlu0 %v330_v32, %s3300_s8 }
 0x1db   :  { %v333_v34 = vpop.permute.xlu0 %332 }
 0x1dc   :  { %v3383_v35 = vadd.f32 %v333_v34, %v325_v33 }
 0x1de   :  { %3173 = vtanh.f32 %v3383_v35 }
 0x1e8   :  { %v3174_v53 = vpop.eup %3173 }
 0x1e9   :  { %338 = vrot.lane.b32.xlu1 %v3174_v53, %s3299_s7  ;;  %v145_v53 = vadd.f32 %v3376_v21, %v3459_v58 }
 0x25b   :  { %v339_v55 = vpop.permute.xlu1 %338 }
 0x25c   :  { %v341_v56 = vmul.f32 %v3172_v30, %v339_v55 }
 0x25e   :  { %343 = vrot.lane.b32.xlu1 %v341_v56, %s3300_s8 }
 0x2d0   :  { %v344_v1 = vpop.permute.xlu1 %343 }
 0x2d1   :  { %2751 = vmatmul.mubr.msk.f32.vlgmr.msra.gmra.mrb[4].mxu1 %vm173_vm2, %v344_v1  ;;  %2762 = vmatmul.mubr.msk.f32.vlgmr.msra.gmra.mrb[8].mxu0 %vm173_vm2, %v344_v1 }
 0x2d2   :  { %3044 = vmatpush3.bf16.msra.mxu0 %v3430_v49  ;;  %3038 = vmatpush3.bf16.msra.mxu1 %v3395_v39 }
 0x2d3   :  { %3045 = vmatprep.subr.bf16.mxu0 %v3296_v3  ;;  %3039 = vmatprep.subr.bf16.mxu1 %v3296_v3 }
 0x2d4   :  { %2783 = vmatprep.mubr.msk.f32.mxu0 %vm3297_vm1, %v3298_v4  ;;  %2772 = vmatprep.mubr.msk.f32.mxu1 %vm3297_vm1, %v3298_v4 }
 0x2d6   :  { %3047 = vmatpush3.bf16.msra.mxu0 %v3447_v54  ;;  %3041 = vmatpush3.bf16.msra.mxu1 %v3412_v44 }
 0x2d7   :  { %3048 = vmatprep.subr.bf16.mxu1 %v3296_v3  ;;  %3054 = vmatprep.subr.bf16.mxu0 %v3296_v3 }
 0x3a4   :  { %v413_v6 = vpop.f32.mrb[4].mxu1  ;;  %v512_v7 = vpop.f32.mrb[8].mxu0 }
 0x3a5   :  { %v414_v8 = vadd.f32 %v413_v6, %v313_v61  ;;  %v591_v9 = vadd.f32 %v512_v7, %v140_v2  ;;  %v2752_v11 = vpop.f32.mrb[5].mxu1  ;;  %v2763_v12 = vpop.f32.mrb[9].mxu0 }
 0x3a7   :  { %v421_v13 = vadd.f32 %v3488_v5, %v414_v8  ;;  %3175 = vtanh.f32 %v591_v9  ;;  %v2519_v17 = vmul.f32 -1.442695, %v591_v9 }
 0x3a9   :  { %3177 = vtanh.f32 %v421_v13  ;;  %v2516_v18 = vmul.f32 -1.442695, %v421_v13 }
 0x3aa   :  { %3179 = vpow2.f32 %v2519_v17 }
 0x3ab   :  { %3181 = vpow2.f32 %v2516_v18 }
 0x3b1   :  { %v3176_v14 = vpop.eup %3175 }
 0x3b2   :  { %601 = vrot.lane.b32.xlu1 %v3176_v14, %s3299_s7 }
 0x3b3   :  { %v3178_v15 = vpop.eup %3177 }
 0x3b4   :  { %431 = vrot.lane.b32.xlu0 %v3178_v15, %s3299_s7  ;;  %v3180_v19 = vpop.eup %3179 }
 0x3b5   :  { %v3182_v20 = vpop.eup %3181  ;;  %v595_v22 = vadd.f32 1.0, %v3180_v19 }
 0x3b6   :  { %v425_v23 = vadd.f32 1.0, %v3182_v20 }
 0x3b7   :  { %3183 = vrcp.f32 %v595_v22 }
 0x3b8   :  { %3185 = vrcp.f32 %v425_v23 }
 0x3c1   :  { %v3184_v24 = vpop.eup %3183 }
 0x3c2   :  { %v3186_v27 = vpop.eup %3185  ;;  %v599_v30 = vmul.f32 %v3184_v24, %v3383_v35 }
 0x3c3   :  { %v429_v33 = vmul.f32 0.0, %v3186_v27 }
 0x424   :  { %v602_v25 = vpop.permute.xlu1 %601 }
 0x425   :  { %v604_v26 = vmul.f32 %v3184_v24, %v602_v25 }
 0x426   :  { %v432_v28 = vpop.permute.xlu0 %431 }
 0x427   :  { %v434_v29 = vmul.f32 %v3186_v27, %v432_v28  ;;  %606 = vrot.lane.b32.xlu1 %v604_v26, %s3300_s8 }
 0x429   :  { %436 = vrot.lane.b32.xlu0 %v434_v29, %s3300_s8 }
 0x499   :  { %v607_v31 = vpop.permute.xlu1 %606 }
 0x49a   :  { %v3496_v32 = vadd.f32 %v607_v31, %v599_v30 }
 0x49b   :  { %v437_v34 = vpop.permute.xlu0 %436 }
 0x49c   :  { %3187 = vtanh.f32 %v3496_v32  ;;  %v3499_v36 = vadd.f32 %v437_v34, %v429_v33 }
 0x49e   :  { %3189 = vtanh.f32 %v3499_v36 }
 0x4a6   :  { %v3188_v37 = vpop.eup %3187 }
 0x4a7   :  { %612 = vrot.lane.b32.xlu1 %v3188_v37, %s3299_s7  ;;  %v150_v37 = vadd.f32 %v3457_v57, %v3376_v21 }
 0x4a8   :  { %v3190_v38 = vpop.eup %3189 }
 0x4a9   :  { %442 = vrot.lane.b32.xlu0 %v3190_v38, %s3299_s7 }
 0x519   :  { %v613_v40 = vpop.permute.xlu1 %612 }
 0x51a   :  { %v615_v41 = vmul.f32 %v3184_v24, %v613_v40 }
 0x51b   :  { %v443_v35 = vpop.permute.xlu0 %442 }
 0x51c   :  { %v445_v42 = vmul.f32 %v3186_v27, %v443_v35  ;;  %617 = vrot.lane.b32.xlu1 %v615_v41, %s3300_s8 }
 0x51e   :  { %517 = vrot.lane.b32.xlu0 %v445_v42, %s3300_s8 }
 0x58e   :  { %v618_v43 = vpop.permute.xlu1 %617 }
 0x58f   :  { %2784 = vmatmul.mubr.msk.f32.vlgmr.msra.gmra.mrb[10].mxu0 %vm173_vm2, %v618_v43 }
 0x590   :  { %v518_v45 = vpop.permute.xlu0 %517  ;;  %3056 = vmatpush3.bf16.msra.mxu0 %v3395_v39  ;;  %2805 = vmatprep.mubr.msk.f32.mxu0 %vm3297_vm1, %v3298_v4 }
 0x591   :  { %2773 = vmatmul.mubr.msk.f32.vlgmr.msra.gmra.mrb[6].mxu1 %vm173_vm2, %v518_v45  ;;  %3057 = vmatprep.subr.bf16.mxu0 %v3296_v3 }
 0x592   :  { %3050 = vmatpush3.bf16.msra.mxu1 %v3337_v10  ;;  %2794 = vmatprep.mubr.msk.f32.mxu1 %vm3297_vm1, %v3298_v4 }
 0x593   :  { %3051 = vmatprep.subr.bf16.mxu1 %v3296_v3 }
 0x594   :  { %3059 = vmatpush3.bf16.msra.mxu0 %v3412_v44 }
 0x595   :  { %3066 = vmatprep.subr.bf16.mxu0 %v3296_v3 }
 0x596   :  { %3053 = vmatpush3.bf16.msra.mxu1 %v3356_v16 }
 0x597   :  { %3060 = vmatprep.subr.bf16.mxu1 %v3296_v3 }
 0x599   :  { %2795 = vmatmul.mubr.msk.f32.vlgmr.msra.gmra.mrb[8].mxu1 %vm173_vm2, %v618_v43 }
 0x59a   :  { %3062 = vmatpush3.bf16.msra.mxu1 %v3430_v49  ;;  %2816 = vmatprep.mubr.msk.f32.mxu1 %vm3297_vm1, %v3298_v4 }
 0x59b   :  { %3063 = vmatprep.subr.bf16.mxu1 %v3296_v3 }
 0x59e   :  { %3065 = vmatpush3.bf16.msra.mxu1 %v3447_v54 }
 0x59f   :  { %3072 = vmatprep.subr.bf16.mxu1 %v3296_v3 }
 0x662   :  { %v687_v46 = vpop.f32.mrb[10].mxu0 }
 0x663   :  { %v2785_v47 = vpop.f32.mrb[11].mxu0 }
 0x664   :  { %v587_v48 = vpop.f32.mrb[6].mxu1 }
 0x665   :  { %v688_v50 = vadd.f32 %v687_v46, %v587_v48  ;;  %v2774_v51 = vpop.f32.mrb[7].mxu1 }
 0x667   :  { %v691_v52 = vadd.f32 %v3488_v5, %v688_v50 }
 0x669   :  { %3191 = vtanh.f32 %v691_v52  ;;  %v2521_v2 = vmul.f32 -1.442695, %v691_v52 }
 0x66c   :  { %v782_v55 = vpop.f32.mrb[8].mxu1 }
 0x66d   :  { %v861_v56 = vadd.f32 %v782_v55, %v145_v53  ;;  %v2796_v61 = vpop.f32.mrb[9].mxu1 }
 0x66f   :  { %3193 = vtanh.f32 %v861_v56  ;;  %v2524_v6 = vmul.f32 -1.442695, %v861_v56 }
 0x670   :  { %3195 = vpow2.f32 %v2521_v2 }
 0x671   :  { %3197 = vpow2.f32 %v2524_v6 }
 0x673   :  { %v3192_v63 = vpop.eup %3191 }
 0x674   :  { %701 = vrot.lane.b32.xlu0 %v3192_v63, %s3299_s7 }
 0x679   :  { %v3194_v1 = vpop.eup %3193 }
 0x67a   :  { %871 = vrot.lane.b32.xlu1 %v3194_v1, %s3299_s7  ;;  %v3196_v7 = vpop.eup %3195 }
 0x67b   :  { %v695_v8 = vadd.f32 1.0, %v3196_v7  ;;  %v3198_v9 = vpop.eup %3197 }
 0x67c   :  { %v865_v11 = vadd.f32 1.0, %v3198_v9 }
 0x67d   :  { %3199 = vrcp.f32 %v695_v8 }
 0x67e   :  { %3201 = vrcp.f32 %v865_v11 }
 0x687   :  { %v3200_v58 = vpop.eup %3199 }
 0x688   :  { %v3202_v14 = vpop.eup %3201  ;;  %v699_v18 = vmul.f32 %v3200_v58, %v3499_v36 }
 0x689   :  { %v869_v22 = vmul.f32 %v3202_v14, %v3496_v32 }
 0x6e6   :  { %v702_v12 = vpop.permute.xlu0 %701 }
 0x6e7   :  { %v704_v13 = vmul.f32 %v3200_v58, %v702_v12 }
 0x6e9   :  { %706 = vrot.lane.b32.xlu0 %v704_v13, %s3300_s8 }
 0x6ec   :  { %v872_v15 = vpop.permute.xlu1 %871 }
 0x6ed   :  { %v874_v17 = vmul.f32 %v3202_v14, %v872_v15 }
 0x6ef   :  { %876 = vrot.lane.b32.xlu1 %v874_v17, %s3300_s8 }
 0x75b   :  { %v707_v19 = vpop.permute.xlu0 %706 }
 0x75c   :  { %v3535_v20 = vadd.f32 %v707_v19, %v699_v18 }
 0x75e   :  { %3203 = vtanh.f32 %v3535_v20 }
 0x761   :  { %v877_v23 = vpop.permute.xlu1 %876 }
 0x762   :  { %v3539_v24 = vadd.f32 %v877_v23, %v869_v22 }
 0x764   :  { %3205 = vtanh.f32 %v3539_v24 }
 0x768   :  { %v3204_v25 = vpop.eup %3203 }
 0x769   :  { %712 = vrot.lane.b32.xlu0 %v3204_v25, %s3299_s7 }
 0x76e   :  { %v3206_v26 = vpop.eup %3205 }
 0x76f   :  { %882 = vrot.lane.b32.xlu1 %v3206_v26, %s3299_s7 }
 0x7db   :  { %v713_v27 = vpop.permute.xlu0 %712 }
 0x7dc   :  { %v715_v28 = vmul.f32 %v3200_v58, %v713_v27  ;;  %v155_v27 = vadd.f32 %v3376_v21, %v3463_v60 }
 0x7de   :  { %787 = vrot.lane.b32.xlu0 %v715_v28, %s3300_s8 }
 0x7e1   :  { %v883_v29 = vpop.permute.xlu1 %882 }
 0x7e2   :  { %v885_v30 = vmul.f32 %v3202_v14, %v883_v29 }
 0x7e4   :  { %887 = vrot.lane.b32.xlu1 %v885_v30, %s3300_s8 }
 0x850   :  { %v788_v31 = vpop.permute.xlu0 %787 }
 0x851   :  { %2806 = vmatmul.mubr.msk.f32.vlgmr.msra.gmra.mrb[12].mxu0 %vm173_vm2, %v788_v31 }
 0x852   :  { %3068 = vmatpush3.bf16.msra.mxu0 %v3337_v10  ;;  %2827 = vmatprep.mubr.msk.f32.mxu0 %vm3297_vm1, %v3298_v4 }
 0x853   :  { %3069 = vmatprep.subr.bf16.mxu0 %v3296_v3 }
 0x856   :  { %3071 = vmatpush3.bf16.msra.mxu0 %v3356_v16  ;;  %v888_v32 = vpop.permute.xlu1 %887 }
 0x857   :  { %2817 = vmatmul.mubr.msk.f32.vlgmr.msra.gmra.mrb[10].mxu1 %vm173_vm2, %v888_v32  ;;  %3078 = vmatprep.subr.bf16.mxu0 %v3296_v3 }
 0x858   :  { %3074 = vmatpush3.bf16.msra.mxu1 %v3395_v39  ;;  %2838 = vmatprep.mubr.msk.f32.mxu1 %vm3297_vm1, %v3298_v4 }
 0x859   :  { %2828 = vmatmul.mubr.msk.f32.vlgmr.msra.gmra.mrb[14].mxu0 %vm173_vm2, %v888_v32  ;;  %3075 = vmatprep.subr.bf16.mxu1 %v3296_v3 }
 0x85a   :  { %3080 = vmatpush3.bf16.msra.mxu0 %v3430_v49  ;;  %2849 = vmatprep.mubr.msk.f32.mxu0 %vm3297_vm1, %v3298_v4 }
 0x85b   :  { %3081 = vmatprep.subr.bf16.mxu0 %v3296_v3 }
 0x85c   :  { %3077 = vmatpush3.bf16.msra.mxu1 %v3412_v44 }
 0x85d   :  { %3084 = vmatprep.subr.bf16.mxu1 %v3296_v3 }
 0x85e   :  { %3083 = vmatpush3.bf16.msra.mxu0 %v3447_v54 }
 0x85f   :  { %3090 = vmatprep.subr.bf16.mxu0 %v3296_v3 }
 0x924   :  { %v857_v33 = vpop.f32.mrb[12].mxu0 }
 0x925   :  { %v2807_v34 = vpop.f32.mrb[13].mxu0 }
 0x92a   :  { %v957_v36 = vpop.f32.mrb[10].mxu1 }
 0x92b   :  { %v958_v38 = vadd.f32 %v957_v36, %v857_v33  ;;  %v2818_v40 = vpop.f32.mrb[11].mxu1 }
 0x92c   :  { %v1052_v41 = vpop.f32.mrb[14].mxu0 }
 0x92d   :  { %v961_v35 = vadd.f32 %v3488_v5, %v958_v38  ;;  %v1131_v42 = vadd.f32 %v1052_v41, %v150_v37  ;;  %v2829_v43 = vpop.f32.mrb[15].mxu0 }
 0x92f   :  { %3207 = vtanh.f32 %v961_v35  ;;  %v2526_v47 = vmul.f32 -1.442695, %v961_v35  ;;  %v2529_v48 = vmul.f32 -1.442695, %v1131_v42 }
 0x930   :  { %3209 = vtanh.f32 %v1131_v42 }
 0x931   :  { %3211 = vpow2.f32 %v2526_v47 }
 0x932   :  { %3213 = vpow2.f32 %v2529_v48 }
 0x939   :  { %v3208_v45 = vpop.eup %3207 }
 0x93a   :  { %v3210_v46 = vpop.eup %3209  ;;  %971 = vrot.lane.b32.xlu0 %v3208_v45, %s3299_s7 }
 0x93b   :  { %1141 = vrot.lane.b32.xlu1 %v3210_v46, %s3299_s7  ;;  %v3212_v57 = vpop.eup %3211 }
 0x93c   :  { %v3214_v50 = vpop.eup %3213  ;;  %v965_v51 = vadd.f32 1.0, %v3212_v57 }
 0x93d   :  { %v1135_v52 = vadd.f32 1.0, %v3214_v50 }
 0x93e   :  { %3215 = vrcp.f32 %v965_v51 }
 0x93f   :  { %3217 = vrcp.f32 %v1135_v52 }
 0x948   :  { %v3216_v53 = vpop.eup %3215 }
 0x949   :  { %v3218_v56 = vpop.eup %3217  ;;  %v969_v2 = vmul.f32 %v3216_v53, %v3535_v20 }
 0x94a   :  { %v1139_v6 = vmul.f32 %v3218_v56, %v3539_v24 }
 0x9ac   :  { %v972_v55 = vpop.permute.xlu0 %971 }
 0x9ad   :  { %v1142_v61 = vpop.permute.xlu1 %1141  ;;  %v974_v63 = vmul.f32 %v3216_v53, %v972_v55 }
 0x9ae   :  { %v1144_v1 = vmul.f32 %v3218_v56, %v1142_v61 }
 0x9af   :  { %976 = vrot.lane.b32.xlu0 %v974_v63, %s3300_s8 }
 0x9b0   :  { %1146 = vrot.lane.b32.xlu1 %v1144_v1, %s3300_s8 }
 0xa21   :  { %v977_v7 = vpop.permute.xlu0 %976 }
 0xa22   :  { %v1147_v8 = vpop.permute.xlu1 %1146  ;;  %v3576_v9 = vadd.f32 %v977_v7, %v969_v2 }
 0xa23   :  { %v3578_v11 = vadd.f32 %v1147_v8, %v1139_v6 }
 0xa24   :  { %3219 = vtanh.f32 %v3576_v9 }
 0xa25   :  { %3221 = vtanh.f32 %v3578_v11 }
 0xa2e   :  { %v3220_v58 = vpop.eup %3219 }
 0xa2f   :  { %v3222_v12 = vpop.eup %3221  ;;  %982 = vrot.lane.b32.xlu0 %v3220_v58, %s3299_s7  ;;  %v160_v58 = vadd.f32 %v3461_v59, %v3376_v21 }
 0xa30   :  { %1152 = vrot.lane.b32.xlu1 %v3222_v12, %s3299_s7 }
 0xaa1   :  { %v983_v13 = vpop.permute.xlu0 %982 }
 0xaa2   :  { %v1153_v14 = vpop.permute.xlu1 %1152  ;;  %v985_v15 = vmul.f32 %v3216_v53, %v983_v13 }
 0xaa3   :  { %v1155_v17 = vmul.f32 %v3218_v56, %v1153_v14 }
 0xaa4   :  { %1057 = vrot.lane.b32.xlu0 %v985_v15, %s3300_s8 }
 0xaa5   :  { %1157 = vrot.lane.b32.xlu1 %v1155_v17, %s3300_s8 }
 0xb16   :  { %v1058_v18 = vpop.permute.xlu0 %1057 }
 0xb17   :  { %v1158_v19 = vpop.permute.xlu1 %1157  ;;  %2839 = vmatmul.mubr.msk.f32.vlgmr.msra.gmra.mrb[12].mxu1 %vm173_vm2, %v1058_v18 }
 0xb18   :  { %2850 = vmatmul.mubr.msk.f32.vlgmr.msra.gmra.mrb[16].mxu0 %vm173_vm2, %v1158_v19  ;;  %3086 = vmatpush3.bf16.msra.mxu1 %v3337_v10 }
 0xb19   :  { %3087 = vmatprep.subr.bf16.mxu1 %v3296_v3  ;;  %2860 = vmatprep.mubr.msk.f32.mxu1 %vm3297_vm1, %v3298_v4 }
 0xb1a   :  { %3092 = vmatpush3.bf16.msra.mxu0 %v3395_v39  ;;  %2871 = vmatprep.mubr.msk.f32.mxu0 %vm3297_vm1, %v3298_v4 }
 0xb1b   :  { %3093 = vmatprep.subr.bf16.mxu0 %v3296_v3 }
 0xb1c   :  { %3089 = vmatpush3.bf16.msra.mxu1 %v3356_v16 }
 0xb1d   :  { %3096 = vmatprep.subr.bf16.mxu1 %v3296_v3 }
 0xb1e   :  { %3095 = vmatpush3.bf16.msra.mxu0 %v3412_v44 }
 0xb1f   :  { %2861 = vmatmul.mubr.msk.f32.vlgmr.msra.gmra.mrb[14].mxu1 %vm173_vm2, %v1158_v19  ;;  %3102 = vmatprep.subr.bf16.mxu0 %v3296_v3 }
 0xb20   :  { %3098 = vmatpush3.bf16.msra.mxu1 %v3430_v49  ;;  %2882 = vmatprep.mubr.msk.f32.mxu1 %vm3297_vm1, %v3298_v4 }
 0xb21   :  { %3099 = vmatprep.subr.bf16.mxu1 %v3296_v3 }
 0xb24   :  { %3101 = vmatpush3.bf16.msra.mxu1 %v3447_v54 }
 0xb25   :  { %3108 = vmatprep.subr.bf16.mxu1 %v3296_v3 }
 0xbea   :  { %v1127_v20 = vpop.f32.mrb[12].mxu1 }
 0xbeb   :  { %v1227_v22 = vpop.f32.mrb[16].mxu0  ;;  %v2840_v23 = vpop.f32.mrb[13].mxu1 }
 0xbec   :  { %v1228_v24 = vadd.f32 %v1227_v22, %v1127_v20  ;;  %v2851_v25 = vpop.f32.mrb[17].mxu0 }
 0xbee   :  { %v1231_v26 = vadd.f32 %v3488_v5, %v1228_v24 }
 0xbf0   :  { %3223 = vtanh.f32 %v1231_v26  ;;  %v2531_v33 = vmul.f32 -1.442695, %v1231_v26 }
 0xbf2   :  { %v1322_v28 = vpop.f32.mrb[14].mxu1 }
 0xbf3   :  { %v1401_v29 = vadd.f32 %v1322_v28, %v155_v27  ;;  %v2862_v30 = vpop.f32.mrb[15].mxu1 }
 0xbf5   :  { %3225 = vtanh.f32 %v1401_v29  ;;  %v2534_v34 = vmul.f32 -1.442695, %v1401_v29 }
 0xbf6   :  { %3227 = vpow2.f32 %v2531_v33 }
 0xbf7   :  { %3229 = vpow2.f32 %v2534_v34 }
 0xbfa   :  { %v3224_v31 = vpop.eup %3223 }
 0xbfb   :  { %1241 = vrot.lane.b32.xlu0 %v3224_v31, %s3299_s7 }
 0xbff   :  { %v3226_v32 = vpop.eup %3225 }
 0xc00   :  { %1411 = vrot.lane.b32.xlu1 %v3226_v32, %s3299_s7  ;;  %v3228_v36 = vpop.eup %3227 }
 0xc01   :  { %v1235_v37 = vadd.f32 1.0, %v3228_v36  ;;  %v3230_v38 = vpop.eup %3229 }
 0xc02   :  { %v1405_v40 = vadd.f32 1.0, %v3230_v38 }
 0xc03   :  { %3231 = vrcp.f32 %v1235_v37 }
 0xc04   :  { %3233 = vrcp.f32 %v1405_v40 }
 0xc0d   :  { %v3232_v60 = vpop.eup %3231 }
 0xc0e   :  { %v3234_v42 = vpop.eup %3233  ;;  %v1239_v46 = vmul.f32 %v3232_v60, %v3576_v9 }
 0xc0f   :  { %v1409_v57 = vmul.f32 %v3234_v42, %v3578_v11 }
 0xc6d   :  { %v1242_v41 = vpop.permute.xlu0 %1241 }
 0xc6e   :  { %v1244_v35 = vmul.f32 %v3232_v60, %v1242_v41 }
 0xc70   :  { %1246 = vrot.lane.b32.xlu0 %v1244_v35, %s3300_s8 }
 0xc72   :  { %v1412_v43 = vpop.permute.xlu1 %1411 }
 0xc73   :  { %v1414_v45 = vmul.f32 %v3234_v42, %v1412_v43 }
 0xc75   :  { %1416 = vrot.lane.b32.xlu1 %v1414_v45, %s3300_s8 }
 0xce2   :  { %v1247_v47 = vpop.permute.xlu0 %1246 }
 0xce3   :  { %v3615_v48 = vadd.f32 %v1247_v47, %v1239_v46 }
 0xce5   :  { %3235 = vtanh.f32 %v3615_v48 }
 0xce7   :  { %v1417_v50 = vpop.permute.xlu1 %1416 }
 0xce8   :  { %v3619_v51 = vadd.f32 %v1417_v50, %v1409_v57 }
 0xcea   :  { %3237 = vtanh.f32 %v3619_v51 }
 0xcef   :  { %v3236_v52 = vpop.eup %3235 }
 0xcf0   :  { %1252 = vrot.lane.b32.xlu0 %v3236_v52, %s3299_s7  ;;  %v165_v52 = vadd.f32 %v3376_v21, %v3467_v0 }
 0xcf4   :  { %v3238_v53 = vpop.eup %3237 }
 0xcf5   :  { %1422 = vrot.lane.b32.xlu1 %v3238_v53, %s3299_s7 }
 0xd62   :  { %v1253_v55 = vpop.permute.xlu0 %1252 }
 0xd63   :  { %v1255_v56 = vmul.f32 %v3232_v60, %v1253_v55 }
 0xd65   :  { %1327 = vrot.lane.b32.xlu0 %v1255_v56, %s3300_s8 }
 0xd67   :  { %v1423_v61 = vpop.permute.xlu1 %1422 }
 0xd68   :  { %v1425_v63 = vmul.f32 %v3234_v42, %v1423_v61 }
 0xd6a   :  { %1427 = vrot.lane.b32.xlu1 %v1425_v63, %s3300_s8 }
 0xdd7   :  { %v1328_v1 = vpop.permute.xlu0 %1327 }
 0xdd8   :  { %2872 = vmatmul.mubr.msk.f32.vlgmr.msra.gmra.mrb[18].mxu0 %vm173_vm2, %v1328_v1 }
 0xdd9   :  { %3104 = vmatpush3.bf16.msra.mxu0 %v3337_v10  ;;  %2893 = vmatprep.mubr.msk.f32.mxu0 %vm3297_vm1, %v3298_v4 }
 0xdda   :  { %3105 = vmatprep.subr.bf16.mxu0 %v3296_v3 }
 0xddc   :  { %v1428_v2 = vpop.permute.xlu1 %1427 }
 0xddd   :  { %3107 = vmatpush3.bf16.msra.mxu0 %v3356_v16  ;;  %2883 = vmatmul.mubr.msk.f32.vlgmr.msra.gmra.mrb[16].mxu1 %vm173_vm2, %v1428_v2 }
 0xdde   :  { %3110 = vmatpush3.bf16.msra.mxu1 %v3395_v39  ;;  %3114 = vmatprep.subr.bf16.mxu0 %v3296_v3 }
 0xddf   :  { %3111 = vmatprep.subr.bf16.mxu1 %v3296_v3  ;;  %2904 = vmatprep.mubr.msk.f32.mxu1 %vm3297_vm1, %v3298_v4 }
 0xde0   :  { %2894 = vmatmul.mubr.msk.f32.vlgmr.msra.gmra.mrb[20].mxu0 %vm173_vm2, %v1428_v2 }
 0xde1   :  { %3116 = vmatpush3.bf16.msra.mxu0 %v3430_v49  ;;  %2915 = vmatprep.mubr.msk.f32.mxu0 %vm3297_vm1, %v3298_v4 }
 0xde2   :  { %3113 = vmatpush3.bf16.msra.mxu1 %v3412_v44  ;;  %3117 = vmatprep.subr.bf16.mxu0 %v3296_v3 }
 0xde3   :  { %3120 = vmatprep.subr.bf16.mxu1 %v3296_v3 }
 0xde5   :  { %3119 = vmatpush3.bf16.msra.mxu0 %v3447_v54 }
 0xde6   :  { %3126 = vmatprep.subr.bf16.mxu0 %v3296_v3 }
 0xeab   :  { %v1397_v6 = vpop.f32.mrb[18].mxu0 }
 0xeac   :  { %v2873_v7 = vpop.f32.mrb[19].mxu0 }
 0xeb0   :  { %v1497_v8 = vpop.f32.mrb[16].mxu1 }
 0xeb1   :  { %v1498_v9 = vadd.f32 %v1497_v8, %v1397_v6  ;;  %v2884_v11 = vpop.f32.mrb[17].mxu1 }
 0xeb3   :  { %v1501_v12 = vadd.f32 %v3488_v5, %v1498_v9  ;;  %v1592_v13 = vpop.f32.mrb[20].mxu0 }
 0xeb4   :  { %v1671_v14 = vadd.f32 %v1592_v13, %v160_v58  ;;  %v2895_v15 = vpop.f32.mrb[21].mxu0 }
 0xeb5   :  { %3239 = vtanh.f32 %v1501_v12  ;;  %v2536_v19 = vmul.f32 -1.442695, %v1501_v12 }
 0xeb6   :  { %3241 = vtanh.f32 %v1671_v14  ;;  %v2539_v20 = vmul.f32 -1.442695, %v1671_v14 }
 0xeb7   :  { %3243 = vpow2.f32 %v2536_v19 }
 0xeb8   :  { %3245 = vpow2.f32 %v2539_v20 }
 0xebf   :  { %v3240_v17 = vpop.eup %3239 }
 0xec0   :  { %v3242_v18 = vpop.eup %3241  ;;  %1511 = vrot.lane.b32.xlu0 %v3240_v17, %s3299_s7 }
 0xec1   :  { %1681 = vrot.lane.b32.xlu1 %v3242_v18, %s3299_s7  ;;  %v3244_v22 = vpop.eup %3243 }
 0xec2   :  { %v3246_v23 = vpop.eup %3245  ;;  %v1505_v59 = vadd.f32 1.0, %v3244_v22 }
 0xec3   :  { %v1675_v24 = vadd.f32 1.0, %v3246_v23 }
 0xec4   :  { %3247 = vrcp.f32 %v1505_v59 }
 0xec5   :  { %3249 = vrcp.f32 %v1675_v24 }
 0xece   :  { %v3248_v25 = vpop.eup %3247 }
 0xecf   :  { %v3250_v27 = vpop.eup %3249  ;;  %v1509_v31 = vmul.f32 %v3248_v25, %v3615_v48 }
 0xed0   :  { %v1679_v32 = vmul.f32 %v3250_v27, %v3619_v51 }
 0xf32   :  { %v1512_v26 = vpop.permute.xlu0 %1511 }
 0xf33   :  { %v1682_v28 = vpop.permute.xlu1 %1681  ;;  %v1514_v29 = vmul.f32 %v3248_v25, %v1512_v26 }
 0xf34   :  { %v1684_v30 = vmul.f32 %v3250_v27, %v1682_v28 }
 0xf35   :  { %1516 = vrot.lane.b32.xlu0 %v1514_v29, %s3300_s8 }
 0xf36   :  { %1686 = vrot.lane.b32.xlu1 %v1684_v30, %s3300_s8 }
 0xfa7   :  { %v1517_v33 = vpop.permute.xlu0 %1516 }
 0xfa8   :  { %v1687_v34 = vpop.permute.xlu1 %1686  ;;  %v3656_v36 = vadd.f32 %v1517_v33, %v1509_v31 }
 0xfa9   :  { %v3658_v37 = vadd.f32 %v1687_v34, %v1679_v32 }
 0xfaa   :  { %3251 = vtanh.f32 %v3656_v36 }
 0xfab   :  { %3253 = vtanh.f32 %v3658_v37 }
 0xfb4   :  { %v3252_v38 = vpop.eup %3251 }
 0xfb5   :  { %v3254_v40 = vpop.eup %3253  ;;  %1522 = vrot.lane.b32.xlu0 %v3252_v38, %s3299_s7 }
 0xfb6   :  { %1692 = vrot.lane.b32.xlu1 %v3254_v40, %s3299_s7 }
0x1027   :  { %v1523_v60 = vpop.permute.xlu0 %1522 }
0x1028   :  { %v1693_v41 = vpop.permute.xlu1 %1692  ;;  %v1525_v35 = vmul.f32 %v3248_v25, %v1523_v60 }
0x1029   :  { %v1695_v42 = vmul.f32 %v3250_v27, %v1693_v41 }
0x102a   :  { %1597 = vrot.lane.b32.xlu0 %v1525_v35, %s3300_s8 }
0x102b   :  { %1697 = vrot.lane.b32.xlu1 %v1695_v42, %s3300_s8 }
0x109c   :  { %v1598_v43 = vpop.permute.xlu0 %1597 }
0x109d   :  { %v1698_v45 = vpop.permute.xlu1 %1697  ;;  %2905 = vmatmul.mubr.msk.f32.vlgmr.msra.gmra.mrb[18].mxu1 %vm173_vm2, %v1598_v43 }
0x109e   :  { %2916 = vmatmul.mubr.msk.f32.vlgmr.msra.gmra.mrb[22].mxu0 %vm173_vm2, %v1698_v45  ;;  %3122 = vmatpush3.bf16.msra.mxu1 %v3337_v10 }
0x109f   :  { %3123 = vmatprep.subr.bf16.mxu1 %v3296_v3  ;;  %2926 = vmatprep.mubr.msk.f32.mxu1 %vm3297_vm1, %v3298_v4 }
0x10a0   :  { %3128 = vmatpush3.bf16.msra.mxu0 %v3395_v39  ;;  %2937 = vmatprep.mubr.msk.f32.mxu0 %vm3297_vm1, %v3298_v4 }
0x10a1   :  { %3129 = vmatprep.subr.bf16.mxu0 %v3296_v3 }
0x10a2   :  { %3125 = vmatpush3.bf16.msra.mxu1 %v3356_v16 }
0x10a3   :  { %3132 = vmatprep.subr.bf16.mxu1 %v3296_v3 }
0x10a4   :  { %3131 = vmatpush3.bf16.msra.mxu0 %v3412_v44 }
0x10a5   :  { %2927 = vmatmul.mubr.msk.f32.vlgmr.msra.gmra.mrb[20].mxu1 %vm173_vm2, %v1698_v45  ;;  %3138 = vmatprep.subr.bf16.mxu0 %v3296_v3 }
0x10a6   :  { %3134 = vmatpush3.bf16.msra.mxu1 %v3430_v49  ;;  %2948 = vmatprep.mubr.msk.f32.mxu1 %vm3297_vm1, %v3298_v4 }
0x10a7   :  { %3135 = vmatprep.subr.bf16.mxu1 %v3296_v3 }
0x10aa   :  { %3137 = vmatpush3.bf16.msra.mxu1 %v3447_v54 }
0x10ab   :  { %3144 = vmatprep.subr.bf16.mxu1 %v3296_v3 }
0x1170   :  { %v1667_v46 = vpop.f32.mrb[18].mxu1 }
0x1171   :  { %v1767_v47 = vpop.f32.mrb[22].mxu0  ;;  %v2906_v48 = vpop.f32.mrb[19].mxu1 }
0x1172   :  { %v1768_v57 = vadd.f32 %v1767_v47, %v1667_v46  ;;  %v2917_v50 = vpop.f32.mrb[23].mxu0 }
0x1174   :  { %v1771_v51 = vadd.f32 %v3488_v5, %v1768_v57 }
0x1176   :  { %3255 = vtanh.f32 %v1771_v51  ;;  %v2541_v1 = vmul.f32 -1.442695, %v1771_v51 }
0x1178   :  { %v1862_v53 = vpop.f32.mrb[20].mxu1 }
0x1179   :  { %v1941_v55 = vadd.f32 %v1862_v53, %v165_v52  ;;  %v2928_v56 = vpop.f32.mrb[21].mxu1 }
0x117b   :  { %3257 = vtanh.f32 %v1941_v55  ;;  %v2544_v2 = vmul.f32 -1.442695, %v1941_v55 }
0x117c   :  { %3259 = vpow2.f32 %v2541_v1 }
0x117d   :  { %3261 = vpow2.f32 %v2544_v2 }
0x1180   :  { %v3256_v61 = vpop.eup %3255 }
0x1181   :  { %1781 = vrot.lane.b32.xlu0 %v3256_v61, %s3299_s7 }
0x1185   :  { %v3258_v63 = vpop.eup %3257 }
0x1186   :  { %1951 = vrot.lane.b32.xlu1 %v3258_v63, %s3299_s7  ;;  %v3260_v6 = vpop.eup %3259 }
0x1187   :  { %v1775_v7 = vadd.f32 1.0, %v3260_v6  ;;  %v3262_v8 = vpop.eup %3261 }
0x1188   :  { %v1945_v9 = vadd.f32 1.0, %v3262_v8 }
0x1189   :  { %3263 = vrcp.f32 %v1775_v7 }
0x118a   :  { %3265 = vrcp.f32 %v1945_v9 }
0x1193   :  { %v3264_v21 = vpop.eup %3263 }
0x1194   :  { %v3266_v58 = vpop.eup %3265  ;;  %v1779_v14 = vmul.f32 %v3264_v21, %v3656_v36 }
0x1195   :  { %v1949_v18 = vmul.f32 %v3266_v58, %v3658_v37 }
0x11f3   :  { %v1782_v0 = vpop.permute.xlu0 %1781 }
0x11f4   :  { %v1784_v11 = vmul.f32 %v3264_v21, %v1782_v0 }
0x11f6   :  { %1786 = vrot.lane.b32.xlu0 %v1784_v11, %s3300_s8 }
0x11f8   :  { %v1952_v12 = vpop.permute.xlu1 %1951 }
0x11f9   :  { %v1954_v13 = vmul.f32 %v3266_v58, %v1952_v12 }
0x11fb   :  { %1956 = vrot.lane.b32.xlu1 %v1954_v13, %s3300_s8 }
0x1268   :  { %v1787_v15 = vpop.permute.xlu0 %1786 }
0x1269   :  { %v3695_v17 = vadd.f32 %v1787_v15, %v1779_v14 }
0x126b   :  { %3267 = vtanh.f32 %v3695_v17 }
0x126d   :  { %v1957_v19 = vpop.permute.xlu1 %1956 }
0x126e   :  { %v3699_v20 = vadd.f32 %v1957_v19, %v1949_v18 }
0x1270   :  { %3269 = vtanh.f32 %v3699_v20 }
0x1275   :  { %v3268_v22 = vpop.eup %3267 }
0x1276   :  { %1792 = vrot.lane.b32.xlu0 %v3268_v22, %s3299_s7 }
0x127a   :  { %v3270_v23 = vpop.eup %3269 }
0x127b   :  { %1962 = vrot.lane.b32.xlu1 %v3270_v23, %s3299_s7  ;;  %v2337_v23 = vld [vmem:[%s3779_s1 + $0xa8] sm:$0xff] }
0x12e8   :  { %v1793_v59 = vpop.permute.xlu0 %1792 }
0x12e9   :  { %v1795_v24 = vmul.f32 %v3264_v21, %v1793_v59  ;;  %v2338_v59 = vld [vmem:[%s3779_s1 + $0xb0] sm:$0xff] }
0x12eb   :  { %1867 = vrot.lane.b32.xlu0 %v1795_v24, %s3300_s8 }
0x12ed   :  { %v1963_v25 = vpop.permute.xlu1 %1962 }
0x12ee   :  { %v1965_v26 = vmul.f32 %v3266_v58, %v1963_v25  ;;  %v2339_v25 = vld [vmem:[%s3779_s1 + $0xb8] sm:$0xff] }
0x12f0   :  { %1967 = vrot.lane.b32.xlu1 %v1965_v26, %s3300_s8  ;;  %v3160_v26 = vpack.c.bf16 %v2339_v25, %v2338_v59 }
0x135d   :  { %v1868_v27 = vpop.permute.xlu0 %1867 }
0x135e   :  { %2938 = vmatmul.mubr.msk.f32.vlgmr.msra.gmra.mrb[24].mxu0 %vm173_vm2, %v1868_v27 }
0x135f   :  { %3140 = vmatpush3.bf16.msra.mxu0 %v3337_v10  ;;  %2959 = vmatprep.mubr.msk.f32.mxu0 %vm3297_vm1, %v3298_v4 }
0x1360   :  { %3141 = vmatprep.subr.bf16.mxu0 %v3296_v3 }
0x1362   :  { %v1968_v28 = vpop.permute.xlu1 %1967 }
0x1363   :  { %3143 = vmatpush3.bf16.msra.mxu0 %v3356_v16  ;;  %2949 = vmatmul.mubr.msk.f32.vlgmr.msra.gmra.mrb[22].mxu1 %vm173_vm2, %v1968_v28 }
0x1364   :  { %3150 = vmatprep.subr.bf16.mxu0 %v3296_v3  ;;  %3146 = vmatpush3.bf16.msra.mxu1 %v3395_v39 }
0x1365   :  { %3147 = vmatprep.subr.bf16.mxu1 %v3296_v3  ;;  %2970 = vmatprep.mubr.msk.f32.mxu1 %vm3297_vm1, %v3298_v4 }
0x1366   :  { %2960 = vmatmul.mubr.msk.f32.vlgmr.msra.gmra.mrb[26].mxu0 %vm173_vm2, %v1968_v28 }
0x1367   :  { %3152 = vmatpush3.bf16.msra.mxu0 %v3430_v49  ;;  %2981 = vmatprep.mubr.msk.f32.mxu0 %vm3297_vm1, %v3298_v4  ;;  %v3295_v49 = vld [vmem:[%s3779_s1 + $0x90] ss:$0 sm:$0xff] }
0x1368   :  { %3153 = vmatprep.subr.bf16.mxu0 %v3296_v3  ;;  %3149 = vmatpush3.bf16.msra.mxu1 %v3412_v44  ;;  %v170_v31 = vadd.f32 %v3295_v49, %v3465_v62 }
0x1369   :  { %3156 = vmatprep.subr.bf16.mxu1 %v3296_v3 }
0x136b   :  { %3155 = vmatpush3.bf16.msra.mxu0 %v3447_v54 }
0x136c   :  { %2995 = vmatprep.subr.mxu0 %v3298_v4 }
0x1431   :  { %v1937_v10 = vpop.f32.mrb[24].mxu0 }
0x1432   :  { %v2939_v16 = vpop.f32.mrb[25].mxu0 }
0x1436   :  { %v2037_v39 = vpop.f32.mrb[22].mxu1 }
0x1437   :  { %v2038_v29 = vadd.f32 %v2037_v39, %v1937_v10  ;;  %v2950_v30 = vpop.f32.mrb[23].mxu1  ;;  %v2341_v39 = vld [vmem:[%s3779_s1 + $0xc8] sm:$0xff] }
0x1439   :  { %v2041_v32 = vadd.f32 %v3488_v5, %v2038_v29  ;;  %v2132_v44 = vpop.f32.mrb[26].mxu0 }
0x143a   :  { %v2211_v33 = vadd.f32 %v2132_v44, %v170_v31  ;;  %v2961_v34 = vpop.f32.mrb[27].mxu0 }
0x143b   :  { %3271 = vtanh.f32 %v2041_v32  ;;  %v2546_v37 = vmul.f32 -1.442695, %v2041_v32  ;;  %v2554_v32 = vld [vmem:[%s3779_s1 + $0xd0] ss:$0 sm:$0xff] }
0x143c   :  { %3273 = vtanh.f32 %v2211_v33  ;;  %v2549_v38 = vmul.f32 -1.442695, %v2211_v33 }
0x143d   :  { %3275 = vpow2.f32 %v2546_v37 }
0x143e   :  { %3277 = vpow2.f32 %v2549_v38 }
0x1445   :  { %v3272_v54 = vpop.eup %3271 }
0x1446   :  { %v3274_v36 = vpop.eup %3273  ;;  %2051 = vrot.lane.b32.xlu0 %v3272_v54, %s3299_s7 }
0x1447   :  { %2221 = vrot.lane.b32.xlu1 %v3274_v36, %s3299_s7  ;;  %v3276_v40 = vpop.eup %3275 }
0x1448   :  { %v3278_v60 = vpop.eup %3277  ;;  %v2045_v62 = vadd.f32 1.0, %v3276_v40 }
0x1449   :  { %v2215_v41 = vadd.f32 1.0, %v3278_v60 }
0x144a   :  { %3279 = vrcp.f32 %v2045_v62 }
0x144b   :  { %3281 = vrcp.f32 %v2215_v41 }
0x1454   :  { %v3280_v35 = vpop.eup %3279 }
0x1455   :  { %v3282_v43 = vpop.eup %3281  ;;  %v2049_v48 = vmul.f32 %v3280_v35, %v3695_v17 }
0x1456   :  { %v2219_v57 = vmul.f32 %v3282_v43, %v3699_v20 }
0x14b8   :  { %v2052_v42 = vpop.permute.xlu0 %2051 }
0x14b9   :  { %v2222_v45 = vpop.permute.xlu1 %2221  ;;  %v2054_v46 = vmul.f32 %v3280_v35, %v2052_v42 }
0x14ba   :  { %v2224_v47 = vmul.f32 %v3282_v43, %v2222_v45 }
0x14bb   :  { %2056 = vrot.lane.b32.xlu0 %v2054_v46, %s3300_s8 }
0x14bc   :  { %2226 = vrot.lane.b32.xlu1 %v2224_v47, %s3300_s8 }
0x152d   :  { %v2057_v50 = vpop.permute.xlu0 %2056 }
0x152e   :  { %v2227_v51 = vpop.permute.xlu1 %2226  ;;  %v2059_v52 = vadd.f32 %v2057_v50, %v2049_v48 }
0x152f   :  { %v2229_v53 = vadd.f32 %v2227_v51, %v2219_v57 }
0x1530   :  { %3283 = vtanh.f32 %v2059_v52 }
0x1531   :  { %3285 = vtanh.f32 %v2229_v53 }
0x153a   :  { %v3284_v55 = vpop.eup %3283 }
0x153b   :  { %v3286_v56 = vpop.eup %3285  ;;  %2062 = vrot.lane.b32.xlu0 %v3284_v55, %s3299_s7 }
0x153c   :  { %2232 = vrot.lane.b32.xlu1 %v3286_v56, %s3299_s7 }
0x15ad   :  { %v2063_v61 = vpop.permute.xlu0 %2062 }
0x15ae   :  { %v2233_v63 = vpop.permute.xlu1 %2232  ;;  %v2065_v1 = vmul.f32 %v3280_v35, %v2063_v61 }
0x15af   :  { %v2235_v2 = vmul.f32 %v3282_v43, %v2233_v63 }
0x15b0   :  { %2137 = vrot.lane.b32.xlu0 %v2065_v1, %s3300_s8 }
0x15b1   :  { %2237 = vrot.lane.b32.xlu1 %v2235_v2, %s3300_s8 }
0x1622   :  { %v2138_v6 = vpop.permute.xlu0 %2137 }
0x1623   :  { %v2238_v7 = vpop.permute.xlu1 %2237  ;;  %2971 = vmatmul.mubr.msk.f32.vlgmr.msra.gmra.mrb[24].mxu1 %vm173_vm2, %v2138_v6 }
0x1624   :  { %2982 = vmatmul.mubr.msk.f32.vlgmr.msra.gmra.mrb[28].mxu0 %vm173_vm2, %v2238_v7  ;;  %2992 = vmatprep.mubr.msk.f32.mxu1 %vm3297_vm1, %v3298_v4 }
0x1625   :  { %2997 = vmatprep.mubr.msk.f32.mxu0 %vm3297_vm1, %v3298_v4  ;;  %2996 = vmatpush3.xpose.msra.mxu0 %v2341_v39 }
0x16f6   :  { %v2207_v8 = vpop.f32.mrb[24].mxu1 }
0x16f7   :  { %v2307_v9 = vpop.f32.mrb[28].mxu0  ;;  %v2972_v21 = vpop.f32.mrb[25].mxu1 }
0x16f8   :  { %v2308_v0 = vadd.f32 %v2307_v9, %v2207_v8  ;;  %v2983_v11 = vpop.f32.mrb[29].mxu0 }
0x16fa   :  { %v2311_v58 = vadd.f32 %v3488_v5, %v2308_v0  ;;  %v2336_v5 = vld [vmem:[%s3779_s1 + $0xa0] sm:$0xff] }
0x16fb   :  { %v3157_v24 = vpack.c.bf16 %v2337_v23, %v2336_v5 }
0x16fc   :  { %3287 = vtanh.f32 %v2311_v58  ;;  %v2551_v13 = vmul.f32 -1.442695, %v2311_v58 }
0x16fd   :  { %3158 = vmatpush3.bf16.msra.mxu1 %v3157_v24 }
0x16fe   :  { %3289 = vpow2.f32 %v2551_v13  ;;  %3159 = vmatprep.subr.bf16.mxu1 %v3296_v3  ;;  %v2552_v3 = vld [vmem:[%s3779_s1 + $0xc0] ss:$0 sm:$0xff] }
0x1701   :  { %3161 = vmatpush3.bf16.msra.mxu1 %v3160_v26 }
0x1706   :  { %v3288_v12 = vpop.eup %3287 }
0x1707   :  { %2321 = vrot.lane.b32.xlu0 %v3288_v12, %s3299_s7 }
0x1708   :  { %v3290_v14 = vpop.eup %3289 }
0x1709   :  { %v2315_v15 = vadd.f32 1.0, %v3290_v14 }
0x170b   :  { %3291 = vrcp.f32 %v2315_v15 }
0x1715   :  { %v3292_v17 = vpop.eup %3291 }
0x1716   :  { %v2319_v4 = vmul.f32 %v3292_v17, %v2059_v52 }
0x1779   :  { %v2322_v18 = vpop.permute.xlu0 %2321 }
0x177a   :  { %v2324_v19 = vmul.f32 %v3292_v17, %v2322_v18 }
0x177c   :  { %2326 = vrot.lane.b32.xlu1 %v2324_v19, %s3300_s8 }
0x17ee   :  { %v2327_v20 = vpop.permute.xlu1 %2326 }
0x17ef   :  { %v2329_v22 = vadd.f32 %v2327_v20, %v2319_v4 }
0x17f1   :  { %3293 = vtanh.f32 %v2329_v22 }
0x17fb   :  { %v3294_v27 = vpop.eup %3293 }
0x17fc   :  { %2332 = vrot.lane.b32.xlu0 %v3294_v27, %s3299_s7 }
0x186e   :  { %v2333_v28 = vpop.permute.xlu0 %2332 }
0x186f   :  { %v2335_v10 = vmul.f32 %v3292_v17, %v2333_v28 }
0x1871   :  { %2348 = vrot.lane.b32.xlu1 %v2335_v10, %s3300_s8 }
0x18e3   :  { %v2349_v16 = vpop.permute.xlu1 %2348 }
0x18e4   :  { %2993 = vmatmul.mubr.msk.f32.vlgmr.msra.gmra.mrb[26].mxu1 %vm173_vm2, %v2349_v16 }
0x19b7   :  { %v2418_v29 = vpop.f32.mrb[26].mxu1 }
0x19b8   :  { %v2419_v30 = vadd.f32 %v2552_v3, %v2418_v29  ;;  %v2994_v49 = vpop.f32.mrb[27].mxu1 }
0x19ba   :  { %v2422_v31 = vmax.f32 %v2419_v30, 0.0 }
0x19bc   :  { %2998 = vmatmul.mubr.f32.vlgmr.msra.gmra.mrb[30].mxu0 %v2422_v31 }
0x1a8f   :  { %v2493_v44 = vpop.f32.mrb[30].mxu0 }
0x1a90   :  { %v2494_v33 = vadd.f32 %v2554_v32, %v2493_v44  ;;  %v2999_v34 = vpop.f32.mrb[31].mxu0 }
0x1a92   :  { %v2498_v54 = vsel %vm2497_vm3, %v2494_v33, 0.0 }
0x1a93   :  { %2499 = vst [vmem:[%s3781_s2] sm:$0xff] %v2498_v54 }

</bundles_post_ra>
